<compile_context>
chip_gen: v5e
topology: v5e:2x2
jax: 0.10.0
libtpu: 0.0.40
codegen_flags: <defaults>
</compile_context>

<pallas_src>
import numpy as np
import jax
import jax.numpy as jnp
from jax import lax
from jax.experimental import pallas as pl
from jax.experimental.pallas import tpu as pltpu


# -----------------------------------------------------------------------------
# Shared in-kernel conv: 3 lane-dense MXU matmuls (one per kh) with the
# block-Toeplitz weight.  Returns the f32 accumulator of shape (TB*H, W*Cout).
# -----------------------------------------------------------------------------
def _conv_acc(x_ref, t_ref):
    TB, Hp, WpC = x_ref.shape
    KH = t_ref.shape[0]
    WC = t_ref.shape[-1]
    H = Hp - (KH - 1)
    M = TB * H
    acc = jnp.zeros((M, WC), jnp.float32)
    for kh in range(KH):                                   # static, unrolled (KH=3)
        rows = x_ref[:, kh:kh + H, :].reshape(M, WpC)      # bf16 (M, Wp*Cin)
        acc = acc + jnp.dot(rows, t_ref[kh],
                            preferred_element_type=jnp.float32)
    return acc


# -----------------------------------------------------------------------------
# Pass 1: conv -> partial BatchNorm statistics only (no conv tensor writeback).
# -----------------------------------------------------------------------------
def _conv_stats_kernel(x_ref, t_ref, sum_ref, sq_ref):
    acc = _conv_acc(x_ref, t_ref)                          # (M, WC) f32
    M, WC = acc.shape
    pad = (-M) % 8
    if pad:  # static fallback; never taken for H % 8 == 0
        acc = jnp.concatenate([acc, jnp.zeros((pad, WC), acc.dtype)], axis=0)
    # Layout-preserving split of the sublane dim -> pure VPU vreg adds.
    # NOTE: E[x^2]-E[x]^2 in f32 can cancel for large |mean|; fine at these scales.
    sum_ref[0] = acc.reshape(-1, 8, WC).sum(axis=0)        # (8, WC)
    sq_ref[0] = (acc * acc).reshape(-1, 8, WC).sum(axis=0)


# -----------------------------------------------------------------------------
# Pass 2: conv recomputed + fused BN (precomputed scale/shift) + ReLU.
# Output is lane-dense (W*Cout minor) f32.
# -----------------------------------------------------------------------------
def _conv_bn_relu_kernel(x_ref, t_ref, scale_ref, shift_ref, o_ref):
    acc = _conv_acc(x_ref, t_ref)                          # (M, WC) f32
    TB, H, WC = o_ref.shape
    y = jnp.maximum(acc * scale_ref[...] + shift_ref[...], 0.0)
    o_ref[...] = y.reshape(TB, H, WC)


# -----------------------------------------------------------------------------
# Wrapper glue (pure JAX): layout, Toeplitz weight, block sizing, BN finalize.
# -----------------------------------------------------------------------------
def _toeplitz_weight(w, Wp, W):
    """w: (KH, KW, Cin, Cout) HWIO -> T: (KH, Wp*Cin, W*Cout) with
    T[kh, wp*Cin+ci, w*Cout+co] = w[kh, wp-w, ci, co] if 0 <= wp-w < KW else 0."""
    KH, KW, Cin, Cout = w.shape
    kw_idx = jnp.arange(Wp)[:, None] - jnp.arange(W)[None, :]       # (Wp, W)
    valid = (kw_idx >= 0) & (kw_idx < KW)
    g = w[:, jnp.clip(kw_idx, 0, KW - 1), :, :]                     # (KH,Wp,W,Cin,Cout)
    g = jnp.where(valid[None, :, :, None, None], g, 0.0)
    return jnp.transpose(g, (0, 1, 3, 2, 4)).reshape(KH, Wp * Cin, W * Cout)


def _vmem_capacity_bytes():
    try:
        cap = getattr(pltpu.get_tpu_info(), "vmem_capacity_bytes", None)
        if cap:
            return int(cap)
    except Exception:
        pass
    return 64 << 20   # conservative default (v7x per-TensorCore VMEM)


def _choose_block_batch(B, per_item_bytes, budget):
    """Largest divisor TB of B whose block fits `budget`; prefer G = B//TB even
    and >= 2 so ("parallel",) keeps both v7x TensorCores busy."""
    if per_item_bytes > budget:
        raise ValueError(
            f"single batch slice ({per_item_bytes} B) exceeds the per-block VMEM "
            f"budget ({budget} B); reduce H/W/channels or raise the budget")
    fits = [d for d in range(1, B + 1) if B % d == 0 and d * per_item_bytes <= budget]
    preferred = [d for d in fits if (B // d) >= 2 and (B // d) % 2 == 0]
    return max(preferred) if preferred else max(fits)


def same_block3d_forward(x, w, b, gamma, beta, eps=1e-5):
    # x: (N, Cin, D, H, W); w: (3, 3, Cin, Cout) HWIO.
    # Implements kernel_size=(1,3,3), padding=(0,1,1), groups=1, train-mode BN, ReLU.
    # TODO(synk): general kernel_size / padding / groups > 1 are not implemented.
    # Conv bias cancels exactly inside train-mode BatchNorm (the batch mean
    # absorbs it, the variance is unchanged), so it is folded out of the kernel.
    del b
    N, Cin, D, H, W = x.shape
    KH, KW, _, Cout = w.shape
    assert KH == 3 and KW == 3, "SameBlock3d spec: spatial kernel is 3x3"
    B = N * D
    Hp, Wp = H + KH - 1, W + KW - 1
    WpC, WC = Wp * Cin, W * Cout

    # NCDHW -> folded-batch channels-last, spatially pre-padded, bf16 for the MXU.
    x_cl = jnp.transpose(x, (0, 2, 3, 4, 1)).reshape(B, H, W, Cin)
    x_pk = jnp.pad(x_cl, ((0, 0), (1, 1), (1, 1), (0, 0))) \
              .reshape(B, Hp, WpC).astype(jnp.bfloat16)
    t = _toeplitz_weight(w, Wp, W).astype(jnp.bfloat16)             # (3, WpC, WC)

    # Generation-aware block sizing (v5e/v6e 128 MiB, v7x 64 MiB VMEM).
    cap = _vmem_capacity_bytes()
    budget = cap // 4
    per_item = (Hp * WpC * 2 * 2          # bf16 input slice, double-buffered
                + H * WC * 4 * 3          # f32 accumulator + output block (dbl-buf)
                + H * WpC * 2 * 3)        # per-kh row-window relayout temporaries
    fixed = KH * WpC * WC * 2 * 2 + 4 * 8 * WC * 4
    TB = _choose_block_batch(B, per_item, max(budget - fixed, per_item))
    G = B // TB
    vmem_limit = int(min(cap * 9 // 10, max(32 << 20, 2 * (TB * per_item + fixed))))
    cparams = pltpu.CompilerParams(dimension_semantics=("parallel",),
                                   vmem_limit_bytes=vmem_limit)
    conv_flops = 2 * B * H * KH * WpC * WC

    # ---- Pass 1: conv -> partial stats (no HBM round trip of the conv tensor).
    psum, psq = pl.pallas_call(
        _conv_stats_kernel,
        out_shape=(jax.ShapeDtypeStruct((G, 8, WC), jnp.float32),
                   jax.ShapeDtypeStruct((G, 8, WC), jnp.float32)),
        grid_spec=pltpu.PrefetchScalarGridSpec(
            num_scalar_prefetch=0, grid=(G,),
            in_specs=[pl.BlockSpec((TB, Hp, WpC), lambda i: (i, 0, 0)),
                      pl.BlockSpec((KH, WpC, WC), lambda i: (0, 0, 0))],
            out_specs=(pl.BlockSpec((1, 8, WC), lambda i: (i, 0, 0)),
                       pl.BlockSpec((1, 8, WC), lambda i: (i, 0, 0)))),
        compiler_params=cparams,
        cost_estimate=pl.CostEstimate(
            flops=conv_flops, transcendentals=0,
            bytes_accessed=x_pk.size * 2 + t.size * 2 + 2 * G * 8 * WC * 4),
    )(x_pk, t)

    # Finalize BatchNorm batch statistics (biased variance, train mode).
    cnt = float(B * H * W)
    ch_sum = jnp.sum(psum, axis=(0, 1)).reshape(W, Cout).sum(axis=0)
    ch_sq = jnp.sum(psq, axis=(0, 1)).reshape(W, Cout).sum(axis=0)
    mean = ch_sum / cnt
    var = ch_sq / cnt - mean * mean
    scale = gamma * lax.rsqrt(var + eps)
    shift = beta - mean * scale
    # Tile per-channel scale/shift to the lane-dense (w, co) column pattern.
    scale_row = jnp.tile(scale, W).reshape(1, WC).astype(jnp.float32)
    shift_row = jnp.tile(shift, W).reshape(1, WC).astype(jnp.float32)
    # TODO(synk): BatchNorm running_mean/running_var buffer updates are stateful
    # training bookkeeping and do not affect the forward output; not modeled.

    # ---- Pass 2: conv recomputed + fused BN + ReLU, lane-dense f32 store.
    out_bh = pl.pallas_call(
        _conv_bn_relu_kernel,
        out_shape=jax.ShapeDtypeStruct((B, H, WC), jnp.float32),
        grid_spec=pltpu.PrefetchScalarGridSpec(
            num_scalar_prefetch=0, grid=(G,),
            in_specs=[pl.BlockSpec((TB, Hp, WpC), lambda i: (i, 0, 0)),
                      pl.BlockSpec((KH, WpC, WC), lambda i: (0, 0, 0)),
                      pl.BlockSpec((1, WC), lambda i: (0, 0)),
                      pl.BlockSpec((1, WC), lambda i: (0, 0))],
            out_specs=pl.BlockSpec((TB, H, WC), lambda i: (i, 0, 0))),
        compiler_params=cparams,
        cost_estimate=pl.CostEstimate(
            flops=conv_flops + 3 * B * H * WC, transcendentals=0,
            bytes_accessed=(x_pk.size * 2 + t.size * 2
                            + B * H * WC * 4 + 2 * WC * 4)),
    )(x_pk, t, scale_row, shift_row)

    # (B, H, W*Cout) -> NCDHW.
    return out_bh.reshape(N, D, H, W, Cout).transpose(0, 4, 1, 2, 3)


# -----------------------------------------------------------------------------
# Pure-JAX reference (same semantics as the PyTorch module in training mode).
# -----------------------------------------------------------------------------
def same_block3d_reference(x, w, b, gamma, beta, eps=1e-5):
    N, Cin, D, H, W = x.shape
    Cout = w.shape[-1]
    x2 = jnp.transpose(x, (0, 2, 3, 4, 1)).reshape(N * D, H, W, Cin)
    y = lax.conv_general_dilated(
        x2, w, window_strides=(1, 1), padding=((1, 1), (1, 1)),
        dimension_numbers=("NHWC", "HWIO", "NHWC"),
        precision=lax.Precision.HIGHEST) + b
    mean = y.mean(axis=(0, 1, 2))
    var = y.var(axis=(0, 1, 2))                      # biased, train-mode BN
    y = (y - mean) * lax.rsqrt(var + eps) * gamma + beta
    y = jnp.maximum(y, 0.0)
    return y.reshape(N, D, H, W, Cout).transpose(0, 4, 1, 2, 3)


if __name__ == "__main__":
    key = jax.random.PRNGKey(0)
    N, Cin, D, H, W = 2, 4, 8, 16, 16
    Cout = 8

    k1, k2, k3, k4, k5 = jax.random.split(key, 5)
    x = jax.random.normal(k1, (N, Cin, D, H, W), jnp.float32)
    w = 0.1 * jax.random.normal(k2, (3, 3, Cin, Cout), jnp.float32)   # HWIO
    b = 0.1 * jax.random.normal(k3, (Cout,), jnp.float32)
    gamma = 1.0 + 0.1 * jax.random.normal(k4, (Cout,), jnp.float32)
    beta = 0.1 * jax.random.normal(k5, (Cout,), jnp.float32)

    fwd = jax.jit(same_block3d_forward)
    out = jax.block_until_ready(fwd(x, w, b, gamma, beta))

    ref = same_block3d_reference(x, w, b, gamma, beta)
    assert out.shape == ref.shape == (N, Cout, D, H, W), (out.shape, ref.shape)
    np.testing.assert_allclose(np.asarray(out), np.asarray(ref),
                               rtol=2e-2, atol=2e-2)
    print("KERNEL_OK")
</pallas_src>

<mosaic_0001>
module attributes {stable_mosaic.version = 11 : i64} {
  func.func @_conv_stats_kernel(%arg0: i32, %arg1: memref<8x18x72xbf16, #tpu.memory_space<vmem>>, %arg2: memref<3x72x128xbf16, #tpu.memory_space<vmem>>, %arg3: memref<1x8x128xf32, #tpu.memory_space<vmem>>, %arg4: memref<1x8x128xf32, #tpu.memory_space<vmem>>) attributes {dimension_semantics = [#tpu.dimension_semantics<parallel>], iteration_bounds = array<i64: 2>, scalar_prefetch = 0 : i64, scratch_operands = 0 : i64, tpu.core_type = #tpu.core_type<tc>, window_params = [{transform_indices = @transform_0, window_bounds = array<i64: 8, 18, 72>}, {pipeline_mode = #tpu.pipeline_mode<synchronous>, transform_indices = @transform_1, window_bounds = array<i64: 3, 72, 128>}, {transform_indices = @transform_2, window_bounds = array<i64: 1, 8, 128>}, {transform_indices = @transform_3, window_bounds = array<i64: 1, 8, 128>}]} {
    %cst = arith.constant 0.000000e+00 : f32
    %0 = vector.broadcast %cst : f32 to vector<128x128xf32>
    %c0 = arith.constant 0 : index
    %c0_0 = arith.constant 0 : index
    %c0_1 = arith.constant 0 : index
    %1 = vector.load %arg1[%c0, %c0_0, %c0_1] : memref<8x18x72xbf16, #tpu.memory_space<vmem>>, vector<8x16x72xbf16>
    %2 = vector.shape_cast %1 : vector<8x16x72xbf16> to vector<128x72xbf16>
    %c0_2 = arith.constant 0 : index
    %c0_3 = arith.constant 0 : index
    %c0_4 = arith.constant 0 : index
    %3 = vector.load %arg2[%c0_2, %c0_3, %c0_4] : memref<3x72x128xbf16, #tpu.memory_space<vmem>>, vector<1x72x128xbf16>
    %4 = vector.shape_cast %3 : vector<1x72x128xbf16> to vector<72x128xbf16>
    %cst_5 = arith.constant dense<0.000000e+00> : vector<128x128xf32>
    %5 = tpu.matmul %2, %4, %cst_5 {dimension_numbers = #tpu.dot_dimension_numbers<[1], [0], [0], [1], [0, 0, 1, 1], [], []>} : vector<128x72xbf16>, vector<72x128xbf16>, vector<128x128xf32> -> vector<128x128xf32>
    %6 = arith.addf %0, %5 : vector<128x128xf32>
    %c0_6 = arith.constant 0 : index
    %c1 = arith.constant 1 : index
    %c0_7 = arith.constant 0 : index
    %7 = vector.load %arg1[%c0_6, %c1, %c0_7] : memref<8x18x72xbf16, #tpu.memory_space<vmem>>, vector<8x16x72xbf16>
    %8 = vector.shape_cast %7 : vector<8x16x72xbf16> to vector<128x72xbf16>
    %c1_8 = arith.constant 1 : index
    %c0_9 = arith.constant 0 : index
    %c0_10 = arith.constant 0 : index
    %9 = vector.load %arg2[%c1_8, %c0_9, %c0_10] : memref<3x72x128xbf16, #tpu.memory_space<vmem>>, vector<1x72x128xbf16>
    %10 = vector.shape_cast %9 : vector<1x72x128xbf16> to vector<72x128xbf16>
    %cst_11 = arith.constant dense<0.000000e+00> : vector<128x128xf32>
    %11 = tpu.matmul %8, %10, %cst_11 {dimension_numbers = #tpu.dot_dimension_numbers<[1], [0], [0], [1], [0, 0, 1, 1], [], []>} : vector<128x72xbf16>, vector<72x128xbf16>, vector<128x128xf32> -> vector<128x128xf32>
    %12 = arith.addf %6, %11 : vector<128x128xf32>
    %c0_12 = arith.constant 0 : index
    %c2 = arith.constant 2 : index
    %c0_13 = arith.constant 0 : index
    %13 = vector.load %arg1[%c0_12, %c2, %c0_13] : memref<8x18x72xbf16, #tpu.memory_space<vmem>>, vector<8x16x72xbf16>
    %14 = vector.shape_cast %13 : vector<8x16x72xbf16> to vector<128x72xbf16>
    %c2_14 = arith.constant 2 : index
    %c0_15 = arith.constant 0 : index
    %c0_16 = arith.constant 0 : index
    %15 = vector.load %arg2[%c2_14, %c0_15, %c0_16] : memref<3x72x128xbf16, #tpu.memory_space<vmem>>, vector<1x72x128xbf16>
    %16 = vector.shape_cast %15 : vector<1x72x128xbf16> to vector<72x128xbf16>
    %cst_17 = arith.constant dense<0.000000e+00> : vector<128x128xf32>
    %17 = tpu.matmul %14, %16, %cst_17 {dimension_numbers = #tpu.dot_dimension_numbers<[1], [0], [0], [1], [0, 0, 1, 1], [], []>} : vector<128x72xbf16>, vector<72x128xbf16>, vector<128x128xf32> -> vector<128x128xf32>
    %18 = arith.addf %12, %17 : vector<128x128xf32>
    %19 = vector.shape_cast %18 : vector<128x128xf32> to vector<16x8x128xf32>
    %cst_18 = arith.constant dense<0.000000e+00> : vector<8x128xf32>
    %20 = vector.multi_reduction <add>, %19, %cst_18 [0] : vector<16x8x128xf32> to vector<8x128xf32>
    %c0_19 = arith.constant 0 : index
    %c0_20 = arith.constant 0 : index
    %c0_21 = arith.constant 0 : index
    %21 = vector.load %arg3[%c0_19, %c0_20, %c0_21] : memref<1x8x128xf32, #tpu.memory_space<vmem>>, vector<1x8x128xf32>
    %22 = vector.shape_cast %21 : vector<1x8x128xf32> to vector<8x128xf32>
    %23 = vector.shape_cast %20 : vector<8x128xf32> to vector<1x8x128xf32>
    tpu.vector_store %arg3[%c0_19, %c0_20, %c0_21], %23 {strides = array<i32>} : memref<1x8x128xf32, #tpu.memory_space<vmem>>, vector<1x8x128xf32>,
    %24 = arith.mulf %18, %18 : vector<128x128xf32>
    %25 = vector.shape_cast %24 : vector<128x128xf32> to vector<16x8x128xf32>
    %cst_22 = arith.constant dense<0.000000e+00> : vector<8x128xf32>
    %26 = vector.multi_reduction <add>, %25, %cst_22 [0] : vector<16x8x128xf32> to vector<8x128xf32>
    %c0_23 = arith.constant 0 : index
    %c0_24 = arith.constant 0 : index
    %c0_25 = arith.constant 0 : index
    %27 = vector.load %arg4[%c0_23, %c0_24, %c0_25] : memref<1x8x128xf32, #tpu.memory_space<vmem>>, vector<1x8x128xf32>
    %28 = vector.shape_cast %27 : vector<1x8x128xf32> to vector<8x128xf32>
    %29 = vector.shape_cast %26 : vector<8x128xf32> to vector<1x8x128xf32>
    tpu.vector_store %arg4[%c0_23, %c0_24, %c0_25], %29 {strides = array<i32>} : memref<1x8x128xf32, #tpu.memory_space<vmem>>, vector<1x8x128xf32>,
    return
  }
  func.func @transform_0(%arg0: i32) -> (i32, i32, i32) {
    %c0_i32 = arith.constant 0 : i32
    %c0_i32_0 = arith.constant 0 : i32
    %c0_i32_1 = arith.constant 0 : i32
    return %arg0, %c0_i32, %c0_i32_0 : i32, i32, i32
  }
  func.func @transform_1(%arg0: i32) -> (i32, i32, i32) {
    %c0_i32 = arith.constant 0 : i32
    %c0_i32_0 = arith.constant 0 : i32
    %c0_i32_1 = arith.constant 0 : i32
    %c0_i32_2 = arith.constant 0 : i32
    return %c0_i32, %c0_i32_0, %c0_i32_1 : i32, i32, i32
  }
  func.func @transform_2(%arg0: i32) -> (i32, i32, i32) {
    %c0_i32 = arith.constant 0 : i32
    %c0_i32_0 = arith.constant 0 : i32
    %c0_i32_1 = arith.constant 0 : i32
    return %arg0, %c0_i32, %c0_i32_0 : i32, i32, i32
  }
  func.func @transform_3(%arg0: i32) -> (i32, i32, i32) {
    %c0_i32 = arith.constant 0 : i32
    %c0_i32_0 = arith.constant 0 : i32
    %c0_i32_1 = arith.constant 0 : i32
    return %arg0, %c0_i32, %c0_i32_0 : i32, i32, i32
  }
}

module attributes {stable_mosaic.version = 11 : i64} {
  func.func @_conv_bn_relu_kernel(%arg0: i32, %arg1: memref<8x18x72xbf16, #tpu.memory_space<vmem>>, %arg2: memref<3x72x128xbf16, #tpu.memory_space<vmem>>, %arg3: memref<1x128xf32, #tpu.memory_space<vmem>>, %arg4: memref<1x128xf32, #tpu.memory_space<vmem>>, %arg5: memref<8x16x128xf32, #tpu.memory_space<vmem>>) attributes {dimension_semantics = [#tpu.dimension_semantics<parallel>], iteration_bounds = array<i64: 2>, scalar_prefetch = 0 : i64, scratch_operands = 0 : i64, tpu.core_type = #tpu.core_type<tc>, window_params = [{transform_indices = @transform_0, window_bounds = array<i64: 8, 18, 72>}, {pipeline_mode = #tpu.pipeline_mode<synchronous>, transform_indices = @transform_1, window_bounds = array<i64: 3, 72, 128>}, {pipeline_mode = #tpu.pipeline_mode<synchronous>, transform_indices = @transform_2, window_bounds = array<i64: 1, 128>}, {pipeline_mode = #tpu.pipeline_mode<synchronous>, transform_indices = @transform_3, window_bounds = array<i64: 1, 128>}, {transform_indices = @transform_4, window_bounds = array<i64: 8, 16, 128>}]} {
    %cst = arith.constant 0.000000e+00 : f32
    %0 = vector.broadcast %cst : f32 to vector<128x128xf32>
    %c0 = arith.constant 0 : index
    %c0_0 = arith.constant 0 : index
    %c0_1 = arith.constant 0 : index
    %1 = vector.load %arg1[%c0, %c0_0, %c0_1] : memref<8x18x72xbf16, #tpu.memory_space<vmem>>, vector<8x16x72xbf16>
    %2 = vector.shape_cast %1 : vector<8x16x72xbf16> to vector<128x72xbf16>
    %c0_2 = arith.constant 0 : index
    %c0_3 = arith.constant 0 : index
    %c0_4 = arith.constant 0 : index
    %3 = vector.load %arg2[%c0_2, %c0_3, %c0_4] : memref<3x72x128xbf16, #tpu.memory_space<vmem>>, vector<1x72x128xbf16>
    %4 = vector.shape_cast %3 : vector<1x72x128xbf16> to vector<72x128xbf16>
    %cst_5 = arith.constant dense<0.000000e+00> : vector<128x128xf32>
    %5 = tpu.matmul %2, %4, %cst_5 {dimension_numbers = #tpu.dot_dimension_numbers<[1], [0], [0], [1], [0, 0, 1, 1], [], []>} : vector<128x72xbf16>, vector<72x128xbf16>, vector<128x128xf32> -> vector<128x128xf32>
    %6 = arith.addf %0, %5 : vector<128x128xf32>
    %c0_6 = arith.constant 0 : index
    %c1 = arith.constant 1 : index
    %c0_7 = arith.constant 0 : index
    %7 = vector.load %arg1[%c0_6, %c1, %c0_7] : memref<8x18x72xbf16, #tpu.memory_space<vmem>>, vector<8x16x72xbf16>
    %8 = vector.shape_cast %7 : vector<8x16x72xbf16> to vector<128x72xbf16>
    %c1_8 = arith.constant 1 : index
    %c0_9 = arith.constant 0 : index
    %c0_10 = arith.constant 0 : index
    %9 = vector.load %arg2[%c1_8, %c0_9, %c0_10] : memref<3x72x128xbf16, #tpu.memory_space<vmem>>, vector<1x72x128xbf16>
    %10 = vector.shape_cast %9 : vector<1x72x128xbf16> to vector<72x128xbf16>
    %cst_11 = arith.constant dense<0.000000e+00> : vector<128x128xf32>
    %11 = tpu.matmul %8, %10, %cst_11 {dimension_numbers = #tpu.dot_dimension_numbers<[1], [0], [0], [1], [0, 0, 1, 1], [], []>} : vector<128x72xbf16>, vector<72x128xbf16>, vector<128x128xf32> -> vector<128x128xf32>
    %12 = arith.addf %6, %11 : vector<128x128xf32>
    %c0_12 = arith.constant 0 : index
    %c2 = arith.constant 2 : index
    %c0_13 = arith.constant 0 : index
    %13 = vector.load %arg1[%c0_12, %c2, %c0_13] : memref<8x18x72xbf16, #tpu.memory_space<vmem>>, vector<8x16x72xbf16>
    %14 = vector.shape_cast %13 : vector<8x16x72xbf16> to vector<128x72xbf16>
    %c2_14 = arith.constant 2 : index
    %c0_15 = arith.constant 0 : index
    %c0_16 = arith.constant 0 : index
    %15 = vector.load %arg2[%c2_14, %c0_15, %c0_16] : memref<3x72x128xbf16, #tpu.memory_space<vmem>>, vector<1x72x128xbf16>
    %16 = vector.shape_cast %15 : vector<1x72x128xbf16> to vector<72x128xbf16>
    %cst_17 = arith.constant dense<0.000000e+00> : vector<128x128xf32>
    %17 = tpu.matmul %14, %16, %cst_17 {dimension_numbers = #tpu.dot_dimension_numbers<[1], [0], [0], [1], [0, 0, 1, 1], [], []>} : vector<128x72xbf16>, vector<72x128xbf16>, vector<128x128xf32> -> vector<128x128xf32>
    %18 = arith.addf %12, %17 : vector<128x128xf32>
    %c0_18 = arith.constant 0 : index
    %c0_19 = arith.constant 0 : index
    %19 = vector.load %arg3[%c0_18, %c0_19] : memref<1x128xf32, #tpu.memory_space<vmem>>, vector<1x128xf32>
    %20 = vector.broadcast %19 : vector<1x128xf32> to vector<128x128xf32>
    %21 = arith.mulf %18, %20 : vector<128x128xf32>
    %c0_20 = arith.constant 0 : index
    %c0_21 = arith.constant 0 : index
    %22 = vector.load %arg4[%c0_20, %c0_21] : memref<1x128xf32, #tpu.memory_space<vmem>>, vector<1x128xf32>
    %23 = vector.broadcast %22 : vector<1x128xf32> to vector<128x128xf32>
    %24 = arith.addf %21, %23 : vector<128x128xf32>
    %cst_22 = arith.constant 0.000000e+00 : f32
    %25 = vector.broadcast %cst_22 : f32 to vector<128x128xf32>
    %26 = arith.maximumf %24, %25 : vector<128x128xf32>
    %27 = vector.shape_cast %26 : vector<128x128xf32> to vector<8x16x128xf32>
    %c0_23 = arith.constant 0 : index
    %c0_24 = arith.constant 0 : index
    %c0_25 = arith.constant 0 : index
    %28 = vector.load %arg5[%c0_23, %c0_24, %c0_25] : memref<8x16x128xf32, #tpu.memory_space<vmem>>, vector<8x16x128xf32>
    tpu.vector_store %arg5[%c0_23, %c0_24, %c0_25], %27 {strides = array<i32>} : memref<8x16x128xf32, #tpu.memory_space<vmem>>, vector<8x16x128xf32>,
    return
  }
  func.func @transform_0(%arg0: i32) -> (i32, i32, i32) {
    %c0_i32 = arith.constant 0 : i32
    %c0_i32_0 = arith.constant 0 : i32
    %c0_i32_1 = arith.constant 0 : i32
    return %arg0, %c0_i32, %c0_i32_0 : i32, i32, i32
  }
  func.func @transform_1(%arg0: i32) -> (i32, i32, i32) {
    %c0_i32 = arith.constant 0 : i32
    %c0_i32_0 = arith.constant 0 : i32
    %c0_i32_1 = arith.constant 0 : i32
    %c0_i32_2 = arith.constant 0 : i32
    return %c0_i32, %c0_i32_0, %c0_i32_1 : i32, i32, i32
  }
  func.func @transform_2(%arg0: i32) -> (i32, i32) {
    %c0_i32 = arith.constant 0 : i32
    %c0_i32_0 = arith.constant 0 : i32
    %c0_i32_1 = arith.constant 0 : i32
    return %c0_i32, %c0_i32_0 : i32, i32
  }
  func.func @transform_3(%arg0: i32) -> (i32, i32) {
    %c0_i32 = arith.constant 0 : i32
    %c0_i32_0 = arith.constant 0 : i32
    %c0_i32_1 = arith.constant 0 : i32
    return %c0_i32, %c0_i32_0 : i32, i32
  }
  func.func @transform_4(%arg0: i32) -> (i32, i32, i32) {
    %c0_i32 = arith.constant 0 : i32
    %c0_i32_0 = arith.constant 0 : i32
    %c0_i32_1 = arith.constant 0 : i32
    return %arg0, %c0_i32, %c0_i32_0 : i32, i32, i32
  }
}

</mosaic_0001>

<bundles_post_ra>
// kernel: same_block3d_forward.2
= control target key start
LH: loop header
LB: loop body
LE: loop exit
PB: predicated region body
PF: predicated region fallthrough
CT: control target
= control target key end

     0   :  { %s1277_s12 = smov 0   ;;  %s1627_s0 = inlined_call_operand.vmem [shape: bf16[16,18,72], index: 0, kind: input, shape index: {}]   ;;  %s1628_s1 = inlined_call_operand.vmem [shape: bf16[3,72,128], index: 1, kind: input, shape index: {}]   ;;  %s1629_s2 = inlined_call_operand.vmem [shape: f32[2,8,128], index: 2, kind: output, shape index: {0}]   ;;  %s1630_s3 = inlined_call_operand.vmem [shape: f32[2,8,128], index: 3, kind: output, shape index: {1}]  }
   0x1 LB: > { %s1283_s13 = sadd.s32 4294967295, %s1255_s12   ;;  %p1068_p0 = scmp.ge.s32.totalorder %s1255_s12, 1  ;;  %s1255_s12 = sphi %s1277_s12, %s14_s12  }
   0x2   : > { %p142_p1 = scmp.lt.s32.totalorder %s1255_s12, 3 }
   0x4   : > { %p143_p2 = pnand %p1068_p0, %p142_p1 }
   0x5   : > { %s1069_s20 = sshll.u32 (!%p143_p2), %s1283_s13, 3  ;;  %p177_p4 = scmp.lt.s32.totalorder (!%p143_p2), %s1283_s13, 1 }
   0x6   : > { %146 = sbr.rel (%p143_p2) target bundleno = 273 (0x111), region = 28  ;;  %p171_p3 = scmp.lt.s32.totalorder (!%p143_p2), %s1069_s20, 15 }
   0xb   : > { %v1081_v0 = vld [vmem:[%s1628_s1 + $0x44] sm:$0xf]  ;;  %v210_v1 = vld [vmem:[%s1628_s1 + $0x20] sm:$0xf]  ;;  %v1178_v4 = vld [vmem:[%s1628_s1 + $0x68] sm:$0xf] }
   0xc   : > { %v465_v2 = vunpack.c.l.b16 %v1081_v0  ;;  %v610_v3 = vunpack.c.l.b16 %v210_v1  ;;  %vm500_vm0 = vcmask 1043456   ;;  %v830_v5 = vunpack.c.l.b16 %v1178_v4  ;;  %s1636_s20 = smov (!%p171_p3, %s1069_s20), 15  ;;  %v1220_v12 = vld [vmem:[%s1628_s1 + $0x3c] sm:$0xff]  ;;  %v1219_v15 = vld [vmem:[%s1628_s1 + $0x34] sm:$0xff]  ;;  %v1218_v38 = vld [vmem:[%s1628_s1 + $0x2c] sm:$0xff]  ;;  %s1638_s13 = smov (!%p177_p4, %s1283_s13), 1 }
   0xd   : > { %s1240_s23 = smul.u32 12, %s1636_s20  ;;  %v1309_v13 = vld [vmem:[%s1628_s1 + $0x18] sm:$0xff]  ;;  %v1314_v14 = vld [vmem:[%s1628_s1 + $0x60] sm:$0xff]  ;;  %vm219_vm1 = vsmask.f32 3328  ;;  %vm720_vm3 = vcmask 1042432  }
   0xe   : > { %v470_v6 = vpack.c.b16 %v465_v2, %v465_v2  ;;  %v615_v7 = vpack.c.b16 %v610_v3, %v610_v3  ;;  %v835_v8 = vpack.c.b16 %v830_v5, %v830_v5  ;;  %vm220_vm2 = vsmask.f32 7440  ;;  %v1327_v16 = vld [vmem:[%s1628_s1 + $0x10] sm:$0xff]  ;;  %v1332_v17 = vld [vmem:[%s1628_s1 + $0x58] sm:$0xff]  ;;  %v1365_v44 = vld [vmem:[%s1628_s1 + $0x8] sm:$0xff]  ;;  %s1071_s24 = sshll.u32 %s1638_s13, 3 }
   0xf   : > { %s1322_s5 = scalar_lea.vmem %s1627_s0, %s1240_s23  ;;  %vm721_vm4 = vcmask 1046532   ;;  %v1370_v45 = vld [vmem:[%s1628_s1 + $0x50] sm:$0xff]  ;;  %vm1374_vm5 = vmor %vm219_vm1, %vm220_vm2  ;;  %vm475_vm6 = vcmask 588800   ;;  %v1217_v58 = vld [vmem:[%s1628_s1 + $0x24] sm:$0xff]  ;;  %s180_s27 = scalar_lea.vmem %s1629_s2, %s1071_s24 }
  0x10   : > { %v502_v9 = vsel %vm500_vm0, %v470_v6, 0  ;;  %v1297_v10 = vsel %vm500_vm0, %v615_v7, 0  ;;  %v1299_v11 = vsel %vm500_vm0, %v835_v8, 0  ;;  %v186_v18 = vld [vmem:[%s1322_s5] sm:$0xf]  ;;  %vm1380_vm7 = vmor %vm720_vm3, %vm721_vm4  ;;  %v1407_v1 = vld [vmem:[%s1628_s1 + $0x48] sm:$0xff]  ;;  %s184_s30 = scalar_lea.vmem %s1630_s3, %s1071_s24 }
  0x11   : > { %507 = vmatpush.bf16.msra.mxu0 %v502_v9  ;;  %1225 = vmatpush.bf16.msra.mxu3 %v502_v9  ;;  %v1336_v19 = vld [vmem:[%s1322_s5 + $0x4] sm:$0xf]  ;;  %v1339_v20 = vld [vmem:[%s1322_s5 + $0x8] sm:$0x1]  ;;  %v223_v21 = vshrl.u32 %v186_v18, 16  ;;  %v226_v22 = vshll.u32 %v186_v18, 16 }
  0x12   : > { %650 = vmatpush.bf16.msra.mxu1 %v1297_v10  ;;  %870 = vmatpush.bf16.msra.mxu2 %v1299_v11  ;;  %v232_v23 = vshll.u32 %v1336_v19, 16  ;;  %v236_v24 = vshrl.u32 %v1336_v19, 16  ;;  %v198_v25 = vld [vmem:[%s1322_s5 + $0x48] sm:$0xf]  ;;  %v242_v26 = vshll.u32 %v1339_v20, 16  ;;  %v725_v56 = vrot.slane %v1336_v19, 5 }
  0x13   : > { %v1348_v27 = vld [vmem:[%s1322_s5 + $0x4c] sm:$0xf]  ;;  %v1351_v28 = vld [vmem:[%s1322_s5 + $0x50] sm:$0x1]  ;;  %v367_v29 = vshrl.u32 %v198_v25, 16  ;;  %v225_v30 = vrot.slane %v223_v21, 4 }
  0x14   : > { %v228_v31 = vrot.slane %v226_v22, 5  ;;  %v234_v32 = vrot.slane %v232_v23, 5  ;;  %v238_v33 = vrot.slane %v236_v24, 4  ;;  %v244_v34 = vrot.slane %v242_v26, 5  ;;  %v696_v43 = vld [vmem:[%s1322_s5] sm:$0xe] }
  0x15   : > { %508 = vmatpush.bf16.msra.mxu0 %v1220_v12  ;;  %1226 = vmatpush.bf16.msra.mxu3 %v1220_v12  ;;  %v369_v35 = vrot.slane %v367_v29, 4  ;;  %v370_v36 = vshll.u32 %v198_v25, 16  ;;  %v376_v37 = vshll.u32 %v1348_v27, 16  ;;  %v380_v41 = vshrl.u32 %v1348_v27, 16  ;;  %v188_v57 = vld [vmem:[%s1322_s5 + $0xc] sm:$0xf] }
  0x16   : > { %651 = vmatpush.bf16.msra.mxu1 %v1309_v13  ;;  %871 = vmatpush.bf16.msra.mxu2 %v1314_v14  ;;  %v229_v39 = vor.u32 %v228_v31, %v225_v30  ;;  %v239_v40 = vor.u32 %v238_v33, %v234_v32  ;;  %v386_v42 = vshll.u32 %v1351_v28, 16  ;;  %v1162_v55 = vrot.slane %v696_v43, 9  ;;  %v1395_v63 = vld [vmem:[%s1322_s5 + $0x10] sm:$0xf]  ;;  %v1402_v0 = vld [vmem:[%s1628_s1] sm:$0xff] }
  0x17   : > { %v372_v47 = vrot.slane %v370_v36, 5  ;;  %v378_v48 = vrot.slane %v376_v37, 5  ;;  %v382_v51 = vrot.slane %v380_v41, 4  ;;  %v728_v62 = vrot.slane %v1339_v20, 5  ;;  %v1414_v18 = vld [vmem:[%s1322_s5 + $0x14] sm:$0x1] }
  0x18   : > { %v230_v49 = vrot.slane %v229_v39, 4  ;;  %v240_v50 = vrot.slane %v239_v40, 4  ;;  %v388_v54 = vrot.slane %v386_v42, 5  ;;  %v726_v5 = vsel %vm1380_vm7, %v1162_v55, %v725_v56  ;;  %v200_v21 = vld [vmem:[%s1322_s5 + $0x54] sm:$0xf]  ;;  %v1205_v24 = vld [vmem:[%s1322_s5] sm:$0xff] }
  0x19   : > { %509 = vmatpush.bf16.msra.mxu0 %v1219_v15  ;;  %1227 = vmatpush.bf16.msra.mxu3 %v1219_v15  ;;  %v373_v53 = vor.u32 %v372_v47, %v369_v35  ;;  %v383_v61 = vor.u32 %v382_v51, %v378_v48  ;;  %v727_v7 = vrot.slane %v725_v56, 4  ;;  %v789_v8 = vunpack.c.l.b16 %v726_v5  ;;  %v1424_v29 = vld [vmem:[%s1322_s5 + $0x58] sm:$0xf]  ;;  %v1432_v36 = vld [vmem:[%s1322_s5 + $0x5c] sm:$0x1] }
  0x1a   : > { %652 = vmatpush.bf16.msra.mxu1 %v1327_v16  ;;  %872 = vmatpush.bf16.msra.mxu2 %v1332_v17  ;;  %v235_v59 = vsel %vm1374_vm5, %v230_v49, %v234_v32  ;;  %v245_v60 = vsel %vm1374_vm5, %v240_v50, %v244_v34  ;;  %v247_v9 = vshrl.u32 %v188_v57, 16  ;;  %v250_v19 = vshll.u32 %v188_v57, 16  ;;  %v697_v43 = vld [vmem:[%s1322_s5 + $0xc] sm:$0xe]  ;;  %v1210_v52 = vld [vmem:[%s1322_s5 + $0x3c] sm:$0xff] }
  0x1b   : > { %v424_v2 = vunpack.c.l.b16 %v235_v59  ;;  %v425_v3 = vunpack.c.l.b16 %v245_v60  ;;  %v374_v4 = vrot.slane %v373_v53, 4  ;;  %v384_v6 = vrot.slane %v383_v61, 4  ;;  %v190_v59 = vld [vmem:[%s1322_s5 + $0x18] sm:$0xf] }
  0x1c   : > { %v256_v20 = vshll.u32 %v1395_v63, 16  ;;  %v729_v25 = vsel %vm1380_vm7, %v727_v7, %v728_v62  ;;  %v249_v26 = vrot.slane %v247_v9, 4  ;;  %v252_v32 = vrot.slane %v250_v19, 5 }
  0x1d   : > { %510 = vmatpush.bf16.msra.mxu0 %v1218_v38  ;;  %1228 = vmatpush.bf16.msra.mxu3 %v1218_v38  ;;  %v440_v12 = vpack.c.b16 %v425_v3, %v424_v2  ;;  %v379_v15 = vsel %vm1374_vm5, %v374_v4, %v378_v48  ;;  %v389_v22 = vsel %vm1374_vm5, %v384_v6, %v388_v54  ;;  %v790_v31 = vunpack.c.l.b16 %v729_v25  ;;  %v1449_v2 = vld [vmem:[%s1322_s5 + $0x1c] sm:$0xf] }
  0x1e   : > { %653 = vmatpush.bf16.msra.mxu1 %v1365_v44  ;;  %873 = vmatpush.bf16.msra.mxu2 %v1370_v45  ;;  %v436_v23 = vunpack.c.l.b16 %v379_v15  ;;  %v437_v30 = vunpack.c.l.b16 %v389_v22  ;;  %v258_v33 = vrot.slane %v256_v20, 5  ;;  %v260_v34 = vshrl.u32 %v1395_v63, 16 }
  0x1f   : > { %v266_v35 = vshll.u32 %v1414_v18, 16  ;;  %v391_v37 = vshrl.u32 %v200_v21, 16  ;;  %v394_v38 = vshll.u32 %v200_v21, 16  ;;  %v805_v40 = vpack.c.b16 %v790_v31, %v789_v8 }
  0x20   : > { %v446_v39 = vpack.c.b16 %v437_v30, %v436_v23  ;;  %v253_v41 = vor.u32 %v252_v32, %v249_v26  ;;  %v400_v42 = vshll.u32 %v1424_v29, 16  ;;  %v404_v53 = vshrl.u32 %v1424_v29, 16 }
  0x21   : > { %511 = vmatpush.bf16.msra.mxu0 %v1217_v58  ;;  %1229 = vmatpush.bf16.msra.mxu3 %v1217_v58  ;;  %v268_v47 = vrot.slane %v266_v35, 5  ;;  %v393_v48 = vrot.slane %v391_v37, 4  ;;  %v396_v49 = vrot.slane %v394_v38, 5  ;;  %v410_v54 = vshll.u32 %v1432_v36, 16 }
  0x22   : > { %654 = vmatpush.bf16.msra.mxu1 %v1402_v0  ;;  %874 = vmatpush.bf16.msra.mxu2 %v1407_v1  ;;  %v254_v50 = vrot.slane %v253_v41, 4  ;;  %v402_v51 = vrot.slane %v400_v42, 5  ;;  %v1163_v57 = vrot.slane %v697_v43, 9  ;;  %v732_v58 = vrot.slane %v1395_v63, 5  ;;  %v1206_v42 = vld [vmem:[%s1322_s5 + $0xc] sm:$0xff] }
  0x23   : > { %v397_v56 = vor.u32 %v396_v49, %v393_v48  ;;  %v406_v61 = vrot.slane %v404_v53, 4  ;;  %v735_v62 = vrot.slane %v1414_v18, 5  ;;  %v412_v6 = vrot.slane %v410_v54, 5  ;;  %v1471_v43 = vld [vmem:[%s1322_s5 + $0x28] sm:$0xf] }
  0x24   : > { %1098 = vmatmul.msk.bf16.vlgmr.msra.gmra.mxu0 %vm475_vm6, %v440_v12  ;;  %1104 = vmatmul.msk.bf16.vlgmr.msra.gmra.mxu3 %vm475_vm6, %v446_v39  ;;  %v259_v60 = vsel %vm1374_vm5, %v254_v50, %v258_v33  ;;  %v733_v7 = vsel %vm1380_vm7, %v1163_v57, %v732_v58  ;;  %v734_v8 = vrot.slane %v732_v58, 4  ;;  %v271_v63 = vshrl.u32 %v190_v59, 16 }
  0x25   : > { %1230 = vmatpush.bf16.msrb.mxu3 %v1297_v10  ;;  %1154 = vmatmul.msk.bf16.vlgmr.msra.gmra.mxu1 %vm475_vm6, %v1205_v24  ;;  %v262_v10 = vrot.slane %v260_v34, 4  ;;  %v426_v4 = vunpack.c.l.b16 %v259_v60  ;;  %v398_v5 = vrot.slane %v397_v56, 4  ;;  %v274_v15 = vshll.u32 %v190_v59, 16  ;;  %v213_v24 = vld [vmem:[%s1322_s5 + $0x20] sm:$0x1] }
  0x26   : > { %1195 = vmatmul.msk.bf16.vlgmr.msra.gmra.mxu2 %vm475_vm6, %v805_v40  ;;  %v280_v18 = vshll.u32 %v1449_v2, 16  ;;  %v736_v21 = vsel %vm1380_vm7, %v734_v8, %v735_v62  ;;  %v791_v23 = vunpack.c.l.b16 %v733_v7  ;;  %v273_v25 = vrot.slane %v271_v63, 4  ;;  %v698_v40 = vld [vmem:[%s1322_s5 + $0x18] sm:$0xe]  ;;  %v194_v62 = vld [vmem:[%s1322_s5 + $0x30] sm:$0xf] }
  0x27   : > { %v263_v55 = vor.u32 %v262_v10, %v258_v33  ;;  %v403_v12 = vsel %vm1374_vm5, %v398_v5, %v402_v51  ;;  %v276_v26 = vrot.slane %v274_v15, 5  ;;  %v284_v32 = vshrl.u32 %v1449_v2, 16  ;;  %v192_v33 = vld [vmem:[%s1322_s5 + $0x24] sm:$0xf] }
  0x28   : > { %v438_v22 = vunpack.c.l.b16 %v403_v12  ;;  %v282_v31 = vrot.slane %v280_v18, 5  ;;  %v290_v39 = vshll.u32 %v213_v24, 16  ;;  %v739_v41 = vrot.slane %v1449_v2, 5  ;;  %v215_v12 = vld [vmem:[%s1322_s5 + $0x38] sm:$0x1] }
  0x29   : > { %1231 = vmatpush.bf16.msrb.mxu3 %v1309_v13  ;;  %v264_v3 = vrot.slane %v263_v55, 4  ;;  %v407_v13 = vor.u32 %v406_v61, %v402_v51  ;;  %v277_v37 = vor.u32 %v276_v26, %v273_v25  ;;  %v286_v38 = vrot.slane %v284_v32, 4  ;;  %v1483_v61 = vld [vmem:[%s1322_s5 + $0x2c] sm:$0x1] }
  0x2a   : > { %v295_v10 = vshrl.u32 %v192_v33, 16  ;;  %v1164_v51 = vrot.slane %v698_v40, 9  ;;  %v741_v53 = vrot.slane %v739_v41, 4  ;;  %v767_v54 = vrot.slane %v1348_v27, 5  ;;  %v702_v40 = vld [vmem:[%s1322_s5 + $0x48] sm:$0xe] }
  0x2b   : > { %v269_v9 = vsel %vm1374_vm5, %v264_v3, %v268_v47  ;;  %v408_v20 = vrot.slane %v407_v13, 4  ;;  %v298_v47 = vshll.u32 %v192_v33, 16  ;;  %v287_v50 = vor.u32 %v286_v38, %v282_v31  ;;  %v195_v13 = vld [vmem:[%s1322_s5 + $0x34] sm:$0xf]  ;;  %v700_v38 = vld [vmem:[%s1322_s5 + $0x30] sm:$0xe] }
  0x2c   : > { %v427_v19 = vunpack.c.l.b16 %v269_v9  ;;  %v278_v55 = vrot.slane %v277_v37, 4  ;;  %v292_v56 = vrot.slane %v290_v39, 5  ;;  %v304_v57 = vshll.u32 %v1471_v43, 16 }
  0x2d   : > { %1232 = vmatpush.bf16.msrb.mxu3 %v1327_v16  ;;  %v413_v30 = vsel %vm1374_vm5, %v408_v20, %v412_v6  ;;  %v792_v16 = vunpack.c.l.b16 %v736_v21  ;;  %v288_v58 = vrot.slane %v287_v50, 4  ;;  %v300_v59 = vrot.slane %v298_v47, 5 }
  0x2e   : > { %v441_v34 = vpack.c.b16 %v427_v19, %v426_v4  ;;  %v439_v35 = vunpack.c.l.b16 %v413_v30  ;;  %v308_v60 = vshrl.u32 %v1471_v43, 16  ;;  %v740_v2 = vsel %vm1380_vm7, %v1164_v51, %v739_v41  ;;  %v1207_v51 = vld [vmem:[%s1322_s5 + $0x18] sm:$0xff] }
  0x2f   : > { %v806_v49 = vpack.c.b16 %v792_v16, %v791_v23  ;;  %v283_v4 = vsel %vm1374_vm5, %v278_v55, %v282_v31  ;;  %v1494_v5 = vrot.slane %v304_v57, 5  ;;  %v319_v7 = vshrl.u32 %v194_v62, 16 }
  0x30   : > { %v447_v48 = vpack.c.b16 %v439_v35, %v438_v22  ;;  %v310_v6 = vrot.slane %v308_v60, 4  ;;  %v769_v8 = vrot.slane %v767_v54, 4  ;;  %v314_v9 = vshll.u32 %v1483_v61, 16 }
  0x31   : > { %1233 = vmatpush.bf16.msrb.mxu3 %v1365_v44  ;;  %v742_v44 = vrot.slane %v213_v24, 5  ;;  %v793_v15 = vunpack.c.l.b16 %v740_v2  ;;  %v321_v19 = vrot.slane %v319_v7, 4  ;;  %v322_v20 = vshll.u32 %v194_v62, 16 }
  0x32   : > { %v746_v21 = vrot.slane %v1471_v43, 5  ;;  %v328_v22 = vshll.u32 %v195_v13, 16  ;;  %v332_v23 = vshrl.u32 %v195_v13, 16  ;;  %v311_v25 = vor.u32 %v310_v6, %v1494_v5 }
  0x33   : > { %v743_v3 = vsel %vm1380_vm7, %v741_v53, %v742_v44  ;;  %v324_v26 = vrot.slane %v322_v20, 5  ;;  %v338_v30 = vshll.u32 %v215_v12, 16  ;;  %v316_v31 = vrot.slane %v314_v9, 5  ;;  %v699_v53 = vld [vmem:[%s1322_s5 + $0x24] sm:$0xe] }
  0x34   : > { %1099 = vmatmul.msk.bf16.gmra.mxu0 %vm475_vm6, %v441_v34  ;;  %1105 = vmatmul.msk.bf16.gmra.mxu3 %vm475_vm6, %v447_v48  ;;  %v794_v18 = vunpack.c.l.b16 %v743_v3  ;;  %v330_v32 = vrot.slane %v328_v22, 5  ;;  %v334_v33 = vrot.slane %v332_v23, 4  ;;  %v753_v39 = vrot.slane %v195_v13, 5  ;;  %v216_v9 = vld [vmem:[%s1322_s5 + $0x44] sm:$0x1] }
  0x35   : > { %1234 = vmatpush.bf16.msrb.mxu3 %v1402_v0  ;;  %1155 = vmatmul.msk.bf16.gmra.mxu1 %vm475_vm6, %v1206_v42  ;;  %v297_v0 = vrot.slane %v295_v10, 4  ;;  %v325_v35 = vor.u32 %v324_v26, %v321_v19  ;;  %v340_v37 = vrot.slane %v338_v30, 5  ;;  %v1166_v42 = vrot.slane %v700_v38, 9 }
  0x36   : > { %1196 = vmatmul.msk.bf16.gmra.mxu2 %vm475_vm6, %v806_v49  ;;  %v807_v34 = vpack.c.b16 %v794_v18, %v793_v15  ;;  %v335_v41 = vor.u32 %v334_v33, %v330_v32  ;;  %v756_v10 = vrot.slane %v215_v12, 5  ;;  %v1168_v47 = vrot.slane %v702_v40, 9  ;;  %v703_v40 = vld [vmem:[%s1322_s5 + $0x54] sm:$0xe] }
  0x37   : > { %v301_v63 = vor.u32 %v300_v59, %v297_v0  ;;  %v312_v48 = vrot.slane %v311_v25, 4  ;;  %v326_v49 = vrot.slane %v325_v35, 4  ;;  %v755_v50 = vrot.slane %v753_v39, 4 }
  0x38   : > { %v336_v44 = vrot.slane %v335_v41, 4  ;;  %v754_v55 = vsel %vm1380_vm7, %v1166_v42, %v753_v39  ;;  %v748_v3 = vrot.slane %v746_v21, 4  ;;  %v701_v39 = vld [vmem:[%s1322_s5 + $0x3c] sm:$0xe] }
  0x39   : > { %1235 = vmatpush.bf16.msra.mxu3 %v1299_v11  ;;  %v770_v11 = vrot.slane %v1351_v28, 5  ;;  %v293_v28 = vsel %vm1374_vm5, %v288_v58, %v292_v56  ;;  %v302_v16 = vrot.slane %v301_v63, 4  ;;  %v768_v56 = vsel %vm1380_vm7, %v1168_v47, %v767_v54  ;;  %v1211_v58 = vld [vmem:[%s1322_s5 + $0x48] sm:$0xff]  ;;  %v197_v63 = vld [vmem:[%s1322_s5 + $0x40] sm:$0xf] }
  0x3a   : > { %v429_v24 = vunpack.c.l.b16 %v293_v28  ;;  %v757_v0 = vsel %vm1380_vm7, %v755_v50, %v756_v10  ;;  %v797_v59 = vunpack.c.l.b16 %v754_v55  ;;  %v801_v60 = vunpack.c.l.b16 %v768_v56  ;;  %v196_v28 = vld [vmem:[%s1322_s5 + $0x3c] sm:$0xf]  ;;  %v1212_v56 = vld [vmem:[%s1322_s5 + $0x54] sm:$0xff] }
  0x3b   : > { %v771_v57 = vsel %vm1380_vm7, %v769_v8, %v770_v11  ;;  %v341_v62 = vsel %vm1374_vm5, %v336_v44, %v340_v37  ;;  %v798_v27 = vunpack.c.l.b16 %v757_v0  ;;  %v1165_v11 = vrot.slane %v699_v53, 9 }
  0x3c   : > { %v802_v54 = vunpack.c.l.b16 %v771_v57  ;;  %v1533_v6 = vunpack.c.l.b16 %v341_v62  ;;  %v307_v8 = vsel %vm1374_vm5, %v302_v16, %v1494_v5  ;;  %v343_v12 = vshrl.u32 %v196_v28, 16 }
  0x3d   : > { %1236 = vmatpush.bf16.msra.mxu3 %v1314_v14  ;;  %v428_v14 = vunpack.c.l.b16 %v283_v4  ;;  %v749_v4 = vrot.slane %v1483_v61, 5  ;;  %v1536_v13 = vpack.c.b16 %v798_v27, %v797_v59  ;;  %v317_v61 = vsel %vm1374_vm5, %v312_v48, %v316_v31  ;;  %v1209_v27 = vld [vmem:[%s1322_s5 + $0x30] sm:$0xff] }
  0x3e   : > { %v1538_v7 = vpack.c.b16 %v802_v54, %v801_v60  ;;  %v346_v15 = vshll.u32 %v196_v28, 16  ;;  %v352_v18 = vshll.u32 %v197_v63, 16  ;;  %v356_v19 = vshrl.u32 %v197_v63, 16 }
  0x3f   : > { %v747_v20 = vsel %vm1380_vm7, %v1165_v11, %v746_v21  ;;  %v750_v5 = vsel %vm1380_vm7, %v748_v3, %v749_v4  ;;  %v345_v22 = vrot.slane %v343_v12, 4  ;;  %v430_v26 = vunpack.c.l.b16 %v307_v8 }
  0x40   : > { %v348_v23 = vrot.slane %v346_v15, 5  ;;  %v358_v25 = vrot.slane %v356_v19, 4  ;;  %v431_v30 = vunpack.c.l.b16 %v317_v61  ;;  %v795_v33 = vunpack.c.l.b16 %v747_v20 }
  0x41   : > { %1237 = vmatpush.bf16.msra.mxu3 %v1332_v17  ;;  %v442_v17 = vpack.c.b16 %v429_v24, %v428_v14  ;;  %v362_v14 = vshll.u32 %v216_v9, 16  ;;  %v354_v24 = vrot.slane %v352_v18, 5  ;;  %v796_v43 = vunpack.c.l.b16 %v750_v5 }
  0x42   : > { %v349_v16 = vor.u32 %v348_v23, %v345_v22  ;;  %v760_v35 = vrot.slane %v197_v63, 5  ;;  %v774_v37 = vrot.slane %v1424_v29, 5  ;;  %v443_v38 = vpack.c.b16 %v431_v30, %v430_v26 }
  0x43   : > { %v359_v31 = vor.u32 %v358_v25, %v354_v24  ;;  %v1167_v10 = vrot.slane %v701_v39, 9  ;;  %v1169_v50 = vrot.slane %v703_v40, 9  ;;  %v808_v53 = vpack.c.b16 %v796_v43, %v795_v33 }
  0x44   : > { %1100 = vmatmul.msk.bf16.gmra.mxu0 %vm475_vm6, %v442_v17  ;;  %1160 = vmatmul.msk.bf16.vlgmr.msrb.gmra.mxu3 %vm475_vm6, %v1211_v58  ;;  %v762_v47 = vrot.slane %v760_v35, 4  ;;  %v776_v44 = vrot.slane %v774_v37, 4  ;;  %v777_v55 = vrot.slane %v1432_v36, 5 }
  0x45   : > { %1238 = vmatpush.bf16.msra.mxu3 %v1370_v45  ;;  %v331_v45 = vsel %vm1374_vm5, %v326_v49, %v330_v32  ;;  %1156 = vmatmul.msk.bf16.gmra.mxu1 %vm475_vm6, %v1207_v51  ;;  %v364_v32 = vrot.slane %v362_v14, 5  ;;  %v360_v21 = vrot.slane %v359_v31, 4  ;;  %v763_v49 = vrot.slane %v216_v9, 5  ;;  %v1208_v51 = vld [vmem:[%s1322_s5 + $0x24] sm:$0xff] }
  0x46   : > { %v1526_v2 = vunpack.c.l.b16 %v331_v45  ;;  %1197 = vmatmul.msk.bf16.gmra.mxu2 %vm475_vm6, %v807_v34  ;;  %v350_v34 = vrot.slane %v349_v16, 4  ;;  %v761_v29 = vsel %vm1380_vm7, %v1167_v10, %v760_v35  ;;  %v775_v45 = vsel %vm1380_vm7, %v1169_v50, %v774_v37 }
  0x47   : > { %v365_v42 = vsel %vm1374_vm5, %v360_v21, %v364_v32  ;;  %v764_v46 = vsel %vm1380_vm7, %v762_v47, %v763_v49  ;;  %v799_v58 = vunpack.c.l.b16 %v761_v29  ;;  %v778_v59 = vsel %vm1380_vm7, %v776_v44, %v777_v55 }
  0x48   : > { %v355_v41 = vsel %vm1374_vm5, %v350_v34, %v354_v24  ;;  %v435_v48 = vunpack.c.l.b16 %v365_v42  ;;  %v800_v0 = vunpack.c.l.b16 %v764_v46  ;;  %v803_v60 = vunpack.c.l.b16 %v775_v45 }
  0x49   : > { %1239 = vmatpush.bf16.msra.mxu3 %v1407_v1  ;;  %v444_v1 = vpack.c.b16 %v1533_v6, %v1526_v2  ;;  %v434_v17 = vunpack.c.l.b16 %v355_v41  ;;  %v804_v62 = vunpack.c.l.b16 %v778_v59 }
  0x4a   : > { %v810_v36 = vpack.c.b16 %v800_v0, %v799_v58 }
  0x4b   : > { %v445_v57 = vpack.c.b16 %v435_v48, %v434_v17  ;;  %v812_v2 = vpack.c.b16 %v804_v62, %v803_v60 }
  0x54   : > { %1101 = vmatmul.msk.bf16.gmra.mxu0 %vm475_vm6, %v443_v38  ;;  %1161 = vmatmul.msk.bf16.gmra.mxu3 %vm475_vm6, %v1212_v56 }
  0x55   : > { %1157 = vmatmul.msk.bf16.gmra.mxu1 %vm475_vm6, %v1208_v51 }
  0x56   : > { %1198 = vmatmul.msk.bf16.gmra.mxu2 %vm475_vm6, %v808_v53 }
  0x64   : > { %1102 = vmatmul.msk.bf16.gmra.mxu0 %vm475_vm6, %v444_v1  ;;  %1201 = vmatmul.msk.bf16.vlgmr.msra.gmra.mxu3 %vm475_vm6, %v1538_v7 }
  0x65   : > { %1158 = vmatmul.msk.bf16.gmra.mxu1 %vm475_vm6, %v1209_v27 }
  0x66   : > { %1199 = vmatmul.msk.bf16.gmra.mxu2 %vm475_vm6, %v1536_v13 }
  0x74   : > { %1103 = vmatmul.msk.bf16.gmra.mxu0 %vm475_vm6, %v445_v57  ;;  %1202 = vmatmul.msk.bf16.gmra.mxu3 %vm475_vm6, %v812_v2 }
  0x75   : > { %1159 = vmatmul.msk.bf16.gmra.mxu1 %vm475_vm6, %v1210_v52 }
  0x76   : > { %1200 = vmatmul.msk.bf16.gmra.mxu2 %vm475_vm6, %v810_v36 }
  0xa1   : > { %v513_v54 = vpop.f32.mrf.mxu0 }
  0xa2   : > { %v656_v11 = vpop.f32.mrf.mxu1 }
  0xa3   : > { %v657_v3 = vadd.f32 %v656_v11, %v513_v54 }
  0xa7   : > { %v1592_v4 = vpop.f32.mrf.mxu3 }
  0xa9   : > { %v876_v6 = vpop.f32.mrf.mxu2  ;;  %v515_v13 = vpop.f32.mrf.mxu0 }
  0xaa   : > { %v916_v8 = vadd.f32 %v876_v6, %v657_v3  ;;  %v658_v61 = vpop.f32.mrf.mxu1 }
  0xab   : > { %v659_v39 = vadd.f32 %v658_v61, %v515_v13 }
  0xac   : > { %v948_v29 = vmul.f32 %v916_v8, %v916_v8 }
  0xaf   : > { %v1594_v1 = vpop.f32.mrf.mxu3 }
  0xb1   : > { %v878_v7 = vpop.f32.mrf.mxu2  ;;  %v518_v28 = vpop.f32.mrf.mxu0 }
  0xb2   : > { %v661_v63 = vpop.f32.mrf.mxu1  ;;  %v917_v41 = vadd.f32 %v878_v7, %v659_v39 }
  0xb3   : > { %v662_v40 = vadd.f32 %v661_v63, %v518_v28 }
  0xb4   : > { %v949_v51 = vmul.f32 %v917_v41, %v917_v41  ;;  %v932_v44 = vadd.f32 %v917_v41, %v916_v8 }
  0xb6   : > { %v964_v58 = vadd.f32 %v949_v51, %v948_v29 }
  0xb7   : > { %v1596_v9 = vpop.f32.mrf.mxu3 }
  0xb9   : > { %v881_v12 = vpop.f32.mrf.mxu2  ;;  %v520_v15 = vpop.f32.mrf.mxu0 }
  0xba   : > { %v663_v18 = vpop.f32.mrf.mxu1  ;;  %v918_v48 = vadd.f32 %v881_v12, %v662_v40 }
  0xbb   : > { %v664_v49 = vadd.f32 %v663_v18, %v520_v15 }
  0xbc   : > { %v950_v55 = vmul.f32 %v918_v48, %v918_v48  ;;  %v933_v45 = vadd.f32 %v932_v44, %v918_v48 }
  0xbe   : > { %v965_v36 = vadd.f32 %v964_v58, %v950_v55 }
  0xbf   : > { %v1598_v19 = vpop.f32.mrf.mxu3 }
  0xc1   : > { %v883_v20 = vpop.f32.mrf.mxu2  ;;  %v523_v5 = vpop.f32.mrf.mxu0 }
  0xc2   : > { %v666_v14 = vpop.f32.mrf.mxu1  ;;  %v919_v53 = vadd.f32 %v883_v20, %v664_v49 }
  0xc3   : > { %v667_v50 = vadd.f32 %v666_v14, %v523_v5 }
  0xc4   : > { %v951_v0 = vmul.f32 %v919_v53, %v919_v53  ;;  %v934_v2 = vadd.f32 %v933_v45, %v919_v53 }
  0xc6   : > { %v966_v13 = vadd.f32 %v965_v36, %v951_v0 }
  0xc7   : > { %v1600_v22 = vpop.f32.mrf.mxu3 }
  0xc8   : > { %v687_v40 = vadd.f32 %v1600_v22, %v1592_v4 }
  0xc9   : > { %v886_v23 = vpop.f32.mrf.mxu2  ;;  %v525_v24 = vpop.f32.mrf.mxu0 }
  0xca   : > { %v668_v25 = vpop.f32.mrf.mxu1  ;;  %v920_v56 = vadd.f32 %v886_v23, %v667_v50 }
  0xcb   : > { %v669_v57 = vadd.f32 %v668_v25, %v525_v24 }
  0xcc   : > { %v952_v27 = vmul.f32 %v920_v56, %v920_v56  ;;  %v935_v8 = vadd.f32 %v934_v2, %v920_v56 }
  0xce   : > { %v967_v28 = vadd.f32 %v966_v13, %v952_v27 }
  0xcf   : > { %v1602_v26 = vpop.f32.mrf.mxu3 }
  0xd0   : > { %v689_v48 = vadd.f32 %v1602_v26, %v1594_v1 }
  0xd1   : > { %v888_v30 = vpop.f32.mrf.mxu2  ;;  %v528_v16 = vpop.f32.mrf.mxu0 }
  0xd2   : > { %v671_v31 = vpop.f32.mrf.mxu1  ;;  %v921_v62 = vadd.f32 %v888_v30, %v669_v57 }
  0xd3   : > { %v672_v46 = vadd.f32 %v671_v31, %v528_v16 }
  0xd4   : > { %v953_v61 = vmul.f32 %v921_v62, %v921_v62  ;;  %v936_v63 = vadd.f32 %v935_v8, %v921_v62 }
  0xd6   : > { %v968_v14 = vadd.f32 %v967_v28, %v953_v61 }
  0xd7   : > { %v1604_v32 = vpop.f32.mrf.mxu3 }
  0xd8   : > { %v692_v44 = vadd.f32 %v1604_v32, %v1596_v9 }
  0xd9   : > { %v891_v33 = vpop.f32.mrf.mxu2  ;;  %v530_v43 = vpop.f32.mrf.mxu0 }
  0xda   : > { %v673_v34 = vpop.f32.mrf.mxu1  ;;  %v922_v11 = vadd.f32 %v891_v33, %v672_v46 }
  0xdb   : > { %v674_v3 = vadd.f32 %v673_v34, %v530_v43 }
  0xdc   : > { %v954_v12 = vmul.f32 %v922_v11, %v922_v11  ;;  %v937_v23 = vadd.f32 %v936_v63, %v922_v11 }
  0xde   : > { %v969_v16 = vadd.f32 %v968_v14, %v954_v12 }
  0xdf   : > { %v1606_v21 = vpop.f32.mrf.mxu3 }
  0xe0   : > { %v694_v57 = vadd.f32 %v1606_v21, %v1598_v19 }
  0xe1   : > { %v893_v35 = vpop.f32.mrf.mxu2  ;;  %v533_v37 = vpop.f32.mrf.mxu0 }
  0xe2   : > { %v676_v38 = vpop.f32.mrf.mxu1  ;;  %v923_v7 = vadd.f32 %v893_v35, %v674_v3 }
  0xe3   : > { %v677_v6 = vadd.f32 %v676_v38, %v533_v37 }
  0xe4   : > { %v955_v24 = vmul.f32 %v923_v7, %v923_v7  ;;  %v938_v31 = vadd.f32 %v937_v23, %v923_v7 }
  0xe6   : > { %v970_v35 = vadd.f32 %v969_v16, %v955_v24 }
  0xe7   : > { %v906_v10 = vpop.f32.mrf.mxu3 }
  0xe8   : > { %v928_v50 = vadd.f32 %v906_v10, %v687_v40 }
  0xe9   : > { %v896_v42 = vpop.f32.mrf.mxu2  ;;  %v535_v47 = vpop.f32.mrf.mxu0 }
  0xea   : > { %v678_v17 = vpop.f32.mrf.mxu1  ;;  %v924_v15 = vadd.f32 %v896_v42, %v677_v6  ;;  %v960_v58 = vmul.f32 %v928_v50, %v928_v50 }
  0xeb   : > { %v679_v18 = vadd.f32 %v678_v17, %v535_v47 }
  0xec   : > { %v956_v33 = vmul.f32 %v924_v15, %v924_v15  ;;  %v939_v38 = vadd.f32 %v938_v31, %v924_v15 }
  0xee   : > { %v971_v41 = vadd.f32 %v970_v35, %v956_v33 }
  0xef   : > { %v908_v60 = vpop.f32.mrf.mxu3 }
  0xf0   : > { %v929_v55 = vadd.f32 %v908_v60, %v689_v48 }
  0xf1   : > { %v898_v59 = vpop.f32.mrf.mxu2  ;;  %v538_v52 = vpop.f32.mrf.mxu0 }
  0xf2   : > { %v681_v54 = vpop.f32.mrf.mxu1  ;;  %v925_v25 = vadd.f32 %v898_v59, %v679_v18  ;;  %v961_v10 = vmul.f32 %v929_v55, %v929_v55 }
  0xf3   : > { %v682_v20 = vadd.f32 %v681_v54, %v538_v52 }
  0xf4   : > { %v957_v39 = vmul.f32 %v925_v25, %v925_v25  ;;  %v940_v42 = vadd.f32 %v939_v38, %v925_v25 }
  0xf6   : > { %v972_v51 = vadd.f32 %v971_v41, %v957_v39 }
  0xf7   : > { %v911_v30 = vpop.f32.mrf.mxu3 }
  0xf8   : > { %v930_v45 = vadd.f32 %v911_v30, %v692_v44 }
  0xf9   : > { %v901_v5 = vpop.f32.mrf.mxu2  ;;  %v540_v34 = vpop.f32.mrf.mxu0 }
  0xfa   : > { %v926_v43 = vadd.f32 %v901_v5, %v682_v20  ;;  %v683_v37 = vpop.f32.mrf.mxu1  ;;  %v962_v36 = vmul.f32 %v930_v45, %v930_v45 }
  0xfb   : > { %v684_v17 = vadd.f32 %v683_v37, %v540_v34 }
  0xfc   : > { %v958_v47 = vmul.f32 %v926_v43, %v926_v43  ;;  %v941_v53 = vadd.f32 %v940_v42, %v926_v43 }
  0xfe   : > { %v973_v56 = vadd.f32 %v972_v51, %v958_v47 }
  0xff   : > { %v913_v46 = vpop.f32.mrf.mxu3 }
 0x100   : > { %v931_v59 = vadd.f32 %v913_v46, %v694_v57 }
 0x101   : > { %v903_v49 = vpop.f32.mrf.mxu2 }
 0x102   : > { %v927_v29 = vadd.f32 %v903_v49, %v684_v17  ;;  %v963_v2 = vmul.f32 %v931_v59, %v931_v59 }
 0x104   : > { %v942_v4 = vadd.f32 %v941_v53, %v927_v29  ;;  %v959_v22 = vmul.f32 %v927_v29, %v927_v29 }
 0x106   : > { %v943_v1 = vadd.f32 %v942_v4, %v928_v50  ;;  %v974_v26 = vadd.f32 %v973_v56, %v959_v22 }
 0x108   : > { %v975_v0 = vadd.f32 %v974_v26, %v960_v58  ;;  %v944_v62 = vadd.f32 %v943_v1, %v929_v55 }
 0x10a   : > { %v945_v9 = vadd.f32 %v944_v62, %v930_v45  ;;  %v976_v32 = vadd.f32 %v975_v0, %v961_v10 }
 0x10c   : > { %v946_v60 = vadd.f32 %v945_v9, %v931_v59  ;;  %v977_v19 = vadd.f32 %v976_v32, %v962_v36 }
 0x10e   : > { %947 = vst [vmem:[%s180_s27] sm:$0xff] %v946_v60  ;;  %v978_v21 = vadd.f32 %v977_v19, %v963_v2 }
 0x110   : > { %979 = vst [vmem:[%s184_s30] sm:$0xff] %v978_v21 }
 0x111 PF: > { %s14_s12 = sadd.s32 1, %s1255_s12  }
 0x112   : > { %p11_p5 = scmp.ge.s32.totalorder %s14_s12, 4  }
 0x114   :  { %13 = sbr.rel (!%p11_p5) target bundleno = 1 (0x1), region = 72 }

// kernel: tile.19
= control target key start
LH: loop header
LB: loop body
LE: loop exit
PB: predicated region body
PF: predicated region fallthrough
CT: control target
= control target key end

     0   :  { %s131_s10 = smov 120   ;;  %s132_s11 = smov 104   ;;  %vm3_vm0 = vcmask 64512   ;;  %vm9_vm1 = vcmask 1048512   ;;  %vm15_vm2 = vcmask 982912   ;;  %vm21_vm3 = vcmask 917312   ;;  %s207_s0 = inlined_call_operand.vmem [shape: f32[16,8], index: 0, kind: input, shape index: {}]   ;;  %s208_s1 = inlined_call_operand.vmem [shape: f32[1,128], index: 1, kind: output, shape index: {}]  }
   0x1   :  { %v101_v0 = vld [vmem:[%s207_s0 + $0xf] sm:$0x1]   ;;  %v103_v1 = vld [vmem:[%s207_s0 + $0xd] sm:$0x1]   ;;  %v105_v2 = vld [vmem:[%s207_s0 + $0xb] sm:$0x1]  }
   0x2   :  { %7 = vrot.lane.b32.xlu0 %v101_v0, %s131_s10  ;;  %19 = vrot.lane.b32.xlu1 %v103_v1, %s132_s11  ;;  %s133_s14 = smov 88   ;;  %v102_v3 = vld [vmem:[%s207_s0 + $0xe] sm:$0x1]   ;;  %v104_v4 = vld [vmem:[%s207_s0 + $0xc] sm:$0x1]   ;;  %s134_s19 = smov 112  }
   0x3   :  { %31 = vrot.lane.b32.xlu2 %v105_v2, %s133_s14  ;;  %s135_s20 = smov 96   ;;  %v106_v5 = vld [vmem:[%s207_s0 + $0xa] sm:$0x1]   ;;  %s136_s23 = smov 80   ;;  %v107_v6 = vld [vmem:[%s207_s0 + $0x9] sm:$0x1]  }
   0x4   :  { %v108_v7 = vld [vmem:[%s207_s0 + $0x8] sm:$0x1]   ;;  %s137_s28 = smov 72   ;;  %s138_s29 = smov 64   ;;  %v109_v8 = vld [vmem:[%s207_s0 + $0x7] sm:$0x1]  }
   0x5   :  { %s139_s3 = smov 56   ;;  %v110_v9 = vld [vmem:[%s207_s0 + $0x6] sm:$0x1]   ;;  %v111_v10 = vld [vmem:[%s207_s0 + $0x5] sm:$0x1]   ;;  %s140_s8 = smov 48  }
   0x6   :  { %s141_s9 = smov 40   ;;  %v112_v11 = vld [vmem:[%s207_s0 + $0x4] sm:$0x1]   ;;  %s142_s12 = smov 32   ;;  %v113_v12 = vld [vmem:[%s207_s0 + $0x3] sm:$0x1]  }
   0x7   :  { %v114_v13 = vld [vmem:[%s207_s0 + $0x2] sm:$0x1]   ;;  %s143_s17 = smov 24   ;;  %s144_s18 = smov 16   ;;  %v115_v14 = vld [vmem:[%s207_s0 + $0x1] sm:$0x1]  }
   0x8   :  { %s145_s21 = smov 8   ;;  %v2_v15 = vld [vmem:[%s207_s0] sm:$0x1]   ;;  %vm27_vm4 = vcmask 851712   ;;  %vm33_vm5 = vcmask 786112   ;;  %vm39_vm6 = vcmask 720512  }
   0x9   :  { %4 = vst.msk [vmem:[#allocation0] sm:$0x1] %vm3_vm0, %v2_v15   ;;  %vm45_vm7 = vcmask 654912   ;;  %vm51_vm8 = vcmask 589312   ;;  %vm57_vm9 = vcmask 523712   ;;  %vm63_vm10 = vcmask 458112  }
   0xa   :  { %13 = vrot.lane.b32.xlu0 %v102_v3, %s134_s19  ;;  %25 = vrot.lane.b32.xlu1 %v104_v4, %s135_s20  ;;  %vm69_vm11 = vcmask 392512   ;;  %vm75_vm12 = vcmask 326912   ;;  %vm81_vm13 = vcmask 261312   ;;  %vm87_vm14 = vcmask 195712  }
   0xb   :  { %37 = vrot.lane.b32.xlu2 %v106_v5, %s136_s23  ;;  %vm93_vm15 = vcmask 130112  }
  0x12   :  { %43 = vrot.lane.b32.xlu0 %v107_v6, %s137_s28  ;;  %49 = vrot.lane.b32.xlu1 %v108_v7, %s138_s29 }
  0x13   :  { %55 = vrot.lane.b32.xlu2 %v109_v8, %s139_s3 }
  0x1a   :  { %61 = vrot.lane.b32.xlu0 %v110_v9, %s140_s8  ;;  %67 = vrot.lane.b32.xlu1 %v111_v10, %s141_s9 }
  0x1b   :  { %73 = vrot.lane.b32.xlu2 %v112_v11, %s142_s12 }
  0x22   :  { %79 = vrot.lane.b32.xlu0 %v113_v12, %s143_s17  ;;  %85 = vrot.lane.b32.xlu1 %v114_v13, %s144_s18 }
  0x23   :  { %91 = vrot.lane.b32.xlu2 %v115_v14, %s145_s21 }
  0x5d   :  { %v32_v16 = vpop.permute.xlu2 %31  }
  0x65   :  { %v38_v17 = vpop.permute.xlu2 %37  }
  0x6d   :  { %v56_v18 = vpop.permute.xlu2 %55  }
  0x74   :  { %v8_v19 = vpop.permute.xlu0 %7   ;;  %v20_v20 = vpop.permute.xlu1 %19  }
  0x75   :  { %10 = vst.msk [vmem:[#allocation0] sm:$0x1] %vm9_vm1, %v8_v19   ;;  %v74_v21 = vpop.permute.xlu2 %73  }
  0x7c   :  { %v14_v22 = vpop.permute.xlu0 %13   ;;  %v26_v23 = vpop.permute.xlu1 %25  }
  0x7d   :  { %16 = vst.msk [vmem:[#allocation0] sm:$0x1] %vm15_vm2, %v14_v22   ;;  %v92_v24 = vpop.permute.xlu2 %91  }
  0x7e   :  { %22 = vst.msk [vmem:[#allocation0] sm:$0x1] %vm21_vm3, %v20_v20  }
  0x7f   :  { %28 = vst.msk [vmem:[#allocation0] sm:$0x1] %vm27_vm4, %v26_v23  }
  0x80   :  { %34 = vst.msk [vmem:[#allocation0] sm:$0x1] %vm33_vm5, %v32_v16  }
  0x81   :  { %40 = vst.msk [vmem:[#allocation0] sm:$0x1] %vm39_vm6, %v38_v17  }
  0x84   :  { %v44_v25 = vpop.permute.xlu0 %43   ;;  %v50_v26 = vpop.permute.xlu1 %49  }
  0x85   :  { %46 = vst.msk [vmem:[#allocation0] sm:$0x1] %vm45_vm7, %v44_v25  }
  0x86   :  { %52 = vst.msk [vmem:[#allocation0] sm:$0x1] %vm51_vm8, %v50_v26  }
  0x87   :  { %58 = vst.msk [vmem:[#allocation0] sm:$0x1] %vm57_vm9, %v56_v18  }
  0x8c   :  { %v62_v27 = vpop.permute.xlu0 %61   ;;  %v68_v28 = vpop.permute.xlu1 %67  }
  0x8d   :  { %64 = vst.msk [vmem:[#allocation0] sm:$0x1] %vm63_vm10, %v62_v27  }
  0x8e   :  { %70 = vst.msk [vmem:[#allocation0] sm:$0x1] %vm69_vm11, %v68_v28  }
  0x8f   :  { %76 = vst.msk [vmem:[#allocation0] sm:$0x1] %vm75_vm12, %v74_v21  }
  0x94   :  { %v80_v29 = vpop.permute.xlu0 %79   ;;  %v86_v30 = vpop.permute.xlu1 %85  }
  0x95   :  { %82 = vst.msk [vmem:[#allocation0] sm:$0x1] %vm81_vm13, %v80_v29  }
  0x96   :  { %88 = vst.msk [vmem:[#allocation0] sm:$0x1] %vm87_vm14, %v86_v30  }
  0x97   :  { %94 = vst.msk [vmem:[#allocation0] sm:$0x1] %vm93_vm15, %v92_v24  }
  0x9e   :  { %v97_v31 = vld [vmem:[#allocation0] sm:$0x1] }
  0x9f   :  { %100 = vst [vmem:[%s208_s1] sm:$0x1] %v97_v31 }

// kernel: tile.18
= control target key start
LH: loop header
LB: loop body
LE: loop exit
PB: predicated region body
PF: predicated region fallthrough
CT: control target
= control target key end

     0   :  { %s28_s0 = inlined_call_operand.vmem [shape: f32[8], index: 0, kind: input, shape index: {}]   ;;  %s29_s1 = inlined_call_operand.vmem [shape: f32[16,8], index: 1, kind: output, shape index: {}]  }
   0x1   :  { %v4_v0 = vld [vmem:[%s28_s0] ss:$0 sm:$0xff] }
   0x2   :  { %5 = vst [vmem:[%s29_s1] sm:$0xff] %v4_v0 }
   0x3   :  { %8 = vst [vmem:[%s29_s1 + $0x8] sm:$0xff] %v4_v0 }

// kernel: same_block3d_forward.3
= control target key start
LH: loop header
LB: loop body
LE: loop exit
PB: predicated region body
PF: predicated region fallthrough
CT: control target
= control target key end

     0   :  { %s1305_s15 = smov 0   ;;  %s1699_s0 = inlined_call_operand.vmem [shape: bf16[16,18,72], index: 0, kind: input, shape index: {}]   ;;  %s1700_s1 = inlined_call_operand.vmem [shape: bf16[3,72,128], index: 1, kind: input, shape index: {}]   ;;  %s1701_s2 = inlined_call_operand.vmem [shape: f32[1,128], index: 2, kind: input, shape index: {}]   ;;  %s1702_s3 = inlined_call_operand.vmem [shape: f32[1,128], index: 3, kind: input, shape index: {}]   ;;  %s1703_s4 = inlined_call_operand.vmem [shape: f32[16,16,128], index: 4, kind: output, shape index: {}]  }
   0x1 LB: > { %s1083_s16 = sadd.s32 4294967295, %s1278_s15   ;;  %p1087_p0 = scmp.ge.s32.totalorder %s1278_s15, 1  ;;  %s1278_s15 = sphi %s1305_s15, %s14_s15  }
   0x2   : > { %p164_p1 = scmp.lt.s32.totalorder %s1278_s15, 3 }
   0x4   : > { %p165_p2 = pnand %p1087_p0, %p164_p1 }
   0x5   : > { %s1088_s23 = sshll.u32 (!%p165_p2), %s1083_s16, 3 }
   0x6   : > { %168 = sbr.rel (%p165_p2) target bundleno = 267 (0x10b), region = 36  ;;  %p193_p3 = scmp.lt.s32.totalorder (!%p165_p2), %s1088_s23, 15 }
   0xb   : > { %v1101_v0 = vld [vmem:[%s1700_s1 + $0x44] sm:$0xf]  ;;  %v231_v1 = vld [vmem:[%s1700_s1 + $0x20] sm:$0xf]  ;;  %v1198_v4 = vld [vmem:[%s1700_s1 + $0x68] sm:$0xf] }
   0xc   : > { %v486_v2 = vunpack.c.l.b16 %v1101_v0  ;;  %v631_v3 = vunpack.c.l.b16 %v231_v1  ;;  %vm521_vm0 = vcmask 1043456   ;;  %v851_v5 = vunpack.c.l.b16 %v1198_v4  ;;  %s1709_s23 = smov (!%p193_p3, %s1088_s23), 15  ;;  %v1241_v12 = vld [vmem:[%s1700_s1 + $0x3c] sm:$0xff]  ;;  %v1240_v15 = vld [vmem:[%s1700_s1 + $0x34] sm:$0xff]  ;;  %v1239_v38 = vld [vmem:[%s1700_s1 + $0x2c] sm:$0xff] }
   0xd   : > { %s1261_s26 = smul.u32 12, %s1709_s23  ;;  %v1337_v13 = vld [vmem:[%s1700_s1 + $0x18] sm:$0xff]  ;;  %v1342_v14 = vld [vmem:[%s1700_s1 + $0x60] sm:$0xff]  ;;  %vm240_vm1 = vsmask.f32 3328  ;;  %vm741_vm3 = vcmask 1042432  }
   0xe   : > { %v491_v6 = vpack.c.b16 %v486_v2, %v486_v2  ;;  %v636_v7 = vpack.c.b16 %v631_v3, %v631_v3  ;;  %v856_v8 = vpack.c.b16 %v851_v5, %v851_v5  ;;  %vm241_vm2 = vsmask.f32 7440  ;;  %v1355_v16 = vld [vmem:[%s1700_s1 + $0x10] sm:$0xff]  ;;  %v1360_v17 = vld [vmem:[%s1700_s1 + $0x58] sm:$0xff]  ;;  %v1393_v44 = vld [vmem:[%s1700_s1 + $0x8] sm:$0xff]  ;;  %s1225_s6 = sshll.u32 %s1709_s23, 4 }
   0xf   : > { %s1350_s9 = scalar_lea.vmem %s1699_s0, %s1261_s26  ;;  %vm742_vm4 = vcmask 1046532   ;;  %v1398_v45 = vld [vmem:[%s1700_s1 + $0x50] sm:$0xff]  ;;  %vm1402_vm5 = vmor %vm240_vm1, %vm241_vm2  ;;  %vm496_vm6 = vcmask 588800   ;;  %v1238_v58 = vld [vmem:[%s1700_s1 + $0x24] sm:$0xff] }
  0x10   : > { %v523_v9 = vsel %vm521_vm0, %v491_v6, 0  ;;  %v1324_v10 = vsel %vm521_vm0, %v636_v7, 0  ;;  %v1326_v11 = vsel %vm521_vm0, %v856_v8, 0  ;;  %v207_v18 = vld [vmem:[%s1350_s9] sm:$0xf]  ;;  %vm1408_vm7 = vmor %vm741_vm3, %vm742_vm4  ;;  %v1435_v1 = vld [vmem:[%s1700_s1 + $0x48] sm:$0xff] }
  0x11   : > { %528 = vmatpush.bf16.msra.mxu0 %v523_v9  ;;  %1246 = vmatpush.bf16.msra.mxu3 %v523_v9  ;;  %v1364_v19 = vld [vmem:[%s1350_s9 + $0x4] sm:$0xf]  ;;  %v1367_v20 = vld [vmem:[%s1350_s9 + $0x8] sm:$0x1]  ;;  %v244_v21 = vshrl.u32 %v207_v18, 16  ;;  %v247_v22 = vshll.u32 %v207_v18, 16 }
  0x12   : > { %671 = vmatpush.bf16.msra.mxu1 %v1324_v10  ;;  %891 = vmatpush.bf16.msra.mxu2 %v1326_v11  ;;  %v253_v23 = vshll.u32 %v1364_v19, 16  ;;  %v257_v24 = vshrl.u32 %v1364_v19, 16  ;;  %v219_v25 = vld [vmem:[%s1350_s9 + $0x48] sm:$0xf]  ;;  %v263_v26 = vshll.u32 %v1367_v20, 16  ;;  %v746_v56 = vrot.slane %v1364_v19, 5 }
  0x13   : > { %v1376_v27 = vld [vmem:[%s1350_s9 + $0x4c] sm:$0xf]  ;;  %v1379_v28 = vld [vmem:[%s1350_s9 + $0x50] sm:$0x1]  ;;  %v388_v29 = vshrl.u32 %v219_v25, 16  ;;  %v246_v30 = vrot.slane %v244_v21, 4 }
  0x14   : > { %v249_v31 = vrot.slane %v247_v22, 5  ;;  %v255_v32 = vrot.slane %v253_v23, 5  ;;  %v259_v33 = vrot.slane %v257_v24, 4  ;;  %v265_v34 = vrot.slane %v263_v26, 5  ;;  %v717_v43 = vld [vmem:[%s1350_s9] sm:$0xe] }
  0x15   : > { %529 = vmatpush.bf16.msra.mxu0 %v1241_v12  ;;  %1247 = vmatpush.bf16.msra.mxu3 %v1241_v12  ;;  %v390_v35 = vrot.slane %v388_v29, 4  ;;  %v391_v36 = vshll.u32 %v219_v25, 16  ;;  %v397_v37 = vshll.u32 %v1376_v27, 16  ;;  %v401_v41 = vshrl.u32 %v1376_v27, 16  ;;  %v209_v57 = vld [vmem:[%s1350_s9 + $0xc] sm:$0xf] }
  0x16   : > { %672 = vmatpush.bf16.msra.mxu1 %v1337_v13  ;;  %892 = vmatpush.bf16.msra.mxu2 %v1342_v14  ;;  %v250_v39 = vor.u32 %v249_v31, %v246_v30  ;;  %v260_v40 = vor.u32 %v259_v33, %v255_v32  ;;  %v407_v42 = vshll.u32 %v1379_v28, 16  ;;  %v1182_v55 = vrot.slane %v717_v43, 9  ;;  %v1423_v63 = vld [vmem:[%s1350_s9 + $0x10] sm:$0xf]  ;;  %v1430_v0 = vld [vmem:[%s1700_s1] sm:$0xff] }
  0x17   : > { %v393_v47 = vrot.slane %v391_v36, 5  ;;  %v399_v48 = vrot.slane %v397_v37, 5  ;;  %v403_v51 = vrot.slane %v401_v41, 4  ;;  %v749_v62 = vrot.slane %v1367_v20, 5  ;;  %v1442_v18 = vld [vmem:[%s1350_s9 + $0x14] sm:$0x1] }
  0x18   : > { %v251_v49 = vrot.slane %v250_v39, 4  ;;  %v261_v50 = vrot.slane %v260_v40, 4  ;;  %v409_v54 = vrot.slane %v407_v42, 5  ;;  %v747_v5 = vsel %vm1408_vm7, %v1182_v55, %v746_v56  ;;  %v221_v21 = vld [vmem:[%s1350_s9 + $0x54] sm:$0xf]  ;;  %v1226_v24 = vld [vmem:[%s1350_s9] sm:$0xff] }
  0x19   : > { %530 = vmatpush.bf16.msra.mxu0 %v1240_v15  ;;  %1248 = vmatpush.bf16.msra.mxu3 %v1240_v15  ;;  %v394_v53 = vor.u32 %v393_v47, %v390_v35  ;;  %v404_v61 = vor.u32 %v403_v51, %v399_v48  ;;  %v748_v7 = vrot.slane %v746_v56, 4  ;;  %v810_v8 = vunpack.c.l.b16 %v747_v5  ;;  %v1452_v29 = vld [vmem:[%s1350_s9 + $0x58] sm:$0xf]  ;;  %v1460_v36 = vld [vmem:[%s1350_s9 + $0x5c] sm:$0x1] }
  0x1a   : > { %673 = vmatpush.bf16.msra.mxu1 %v1355_v16  ;;  %893 = vmatpush.bf16.msra.mxu2 %v1360_v17  ;;  %v256_v59 = vsel %vm1402_vm5, %v251_v49, %v255_v32  ;;  %v266_v60 = vsel %vm1402_vm5, %v261_v50, %v265_v34  ;;  %v268_v9 = vshrl.u32 %v209_v57, 16  ;;  %v271_v19 = vshll.u32 %v209_v57, 16  ;;  %v718_v43 = vld [vmem:[%s1350_s9 + $0xc] sm:$0xe]  ;;  %v1231_v52 = vld [vmem:[%s1350_s9 + $0x3c] sm:$0xff] }
  0x1b   : > { %v445_v2 = vunpack.c.l.b16 %v256_v59  ;;  %v446_v3 = vunpack.c.l.b16 %v266_v60  ;;  %v395_v4 = vrot.slane %v394_v53, 4  ;;  %v405_v6 = vrot.slane %v404_v61, 4  ;;  %v211_v59 = vld [vmem:[%s1350_s9 + $0x18] sm:$0xf] }
  0x1c   : > { %v277_v20 = vshll.u32 %v1423_v63, 16  ;;  %v750_v25 = vsel %vm1408_vm7, %v748_v7, %v749_v62  ;;  %v270_v26 = vrot.slane %v268_v9, 4  ;;  %v273_v32 = vrot.slane %v271_v19, 5 }
  0x1d   : > { %531 = vmatpush.bf16.msra.mxu0 %v1239_v38  ;;  %1249 = vmatpush.bf16.msra.mxu3 %v1239_v38  ;;  %v461_v12 = vpack.c.b16 %v446_v3, %v445_v2  ;;  %v400_v15 = vsel %vm1402_vm5, %v395_v4, %v399_v48  ;;  %v410_v22 = vsel %vm1402_vm5, %v405_v6, %v409_v54  ;;  %v811_v31 = vunpack.c.l.b16 %v750_v25  ;;  %v1477_v2 = vld [vmem:[%s1350_s9 + $0x1c] sm:$0xf] }
  0x1e   : > { %674 = vmatpush.bf16.msra.mxu1 %v1393_v44  ;;  %894 = vmatpush.bf16.msra.mxu2 %v1398_v45  ;;  %v457_v23 = vunpack.c.l.b16 %v400_v15  ;;  %v458_v30 = vunpack.c.l.b16 %v410_v22  ;;  %v279_v33 = vrot.slane %v277_v20, 5  ;;  %v281_v34 = vshrl.u32 %v1423_v63, 16 }
  0x1f   : > { %v287_v35 = vshll.u32 %v1442_v18, 16  ;;  %v412_v37 = vshrl.u32 %v221_v21, 16  ;;  %v415_v38 = vshll.u32 %v221_v21, 16  ;;  %v826_v40 = vpack.c.b16 %v811_v31, %v810_v8 }
  0x20   : > { %v467_v39 = vpack.c.b16 %v458_v30, %v457_v23  ;;  %v274_v41 = vor.u32 %v273_v32, %v270_v26  ;;  %v421_v42 = vshll.u32 %v1452_v29, 16  ;;  %v425_v53 = vshrl.u32 %v1452_v29, 16 }
  0x21   : > { %532 = vmatpush.bf16.msra.mxu0 %v1238_v58  ;;  %1250 = vmatpush.bf16.msra.mxu3 %v1238_v58  ;;  %v289_v47 = vrot.slane %v287_v35, 5  ;;  %v414_v48 = vrot.slane %v412_v37, 4  ;;  %v417_v49 = vrot.slane %v415_v38, 5  ;;  %v431_v54 = vshll.u32 %v1460_v36, 16 }
  0x22   : > { %675 = vmatpush.bf16.msra.mxu1 %v1430_v0  ;;  %895 = vmatpush.bf16.msra.mxu2 %v1435_v1  ;;  %v275_v50 = vrot.slane %v274_v41, 4  ;;  %v423_v51 = vrot.slane %v421_v42, 5  ;;  %v1183_v57 = vrot.slane %v718_v43, 9  ;;  %v753_v58 = vrot.slane %v1423_v63, 5  ;;  %v1227_v42 = vld [vmem:[%s1350_s9 + $0xc] sm:$0xff] }
  0x23   : > { %v418_v56 = vor.u32 %v417_v49, %v414_v48  ;;  %v427_v61 = vrot.slane %v425_v53, 4  ;;  %v756_v62 = vrot.slane %v1442_v18, 5  ;;  %v433_v6 = vrot.slane %v431_v54, 5  ;;  %v1499_v43 = vld [vmem:[%s1350_s9 + $0x28] sm:$0xf] }
  0x24   : > { %1118 = vmatmul.msk.bf16.vlgmr.msra.gmra.mxu0 %vm496_vm6, %v461_v12  ;;  %1124 = vmatmul.msk.bf16.vlgmr.msra.gmra.mxu3 %vm496_vm6, %v467_v39  ;;  %v280_v60 = vsel %vm1402_vm5, %v275_v50, %v279_v33  ;;  %v754_v7 = vsel %vm1408_vm7, %v1183_v57, %v753_v58  ;;  %v755_v8 = vrot.slane %v753_v58, 4  ;;  %v292_v63 = vshrl.u32 %v211_v59, 16 }
  0x25   : > { %1251 = vmatpush.bf16.msrb.mxu3 %v1324_v10  ;;  %1174 = vmatmul.msk.bf16.vlgmr.msra.gmra.mxu1 %vm496_vm6, %v1226_v24  ;;  %v283_v10 = vrot.slane %v281_v34, 4  ;;  %v447_v4 = vunpack.c.l.b16 %v280_v60  ;;  %v419_v5 = vrot.slane %v418_v56, 4  ;;  %v295_v15 = vshll.u32 %v211_v59, 16  ;;  %v234_v24 = vld [vmem:[%s1350_s9 + $0x20] sm:$0x1] }
  0x26   : > { %1215 = vmatmul.msk.bf16.vlgmr.msra.gmra.mxu2 %vm496_vm6, %v826_v40  ;;  %v301_v18 = vshll.u32 %v1477_v2, 16  ;;  %v757_v21 = vsel %vm1408_vm7, %v755_v8, %v756_v62  ;;  %v812_v23 = vunpack.c.l.b16 %v754_v7  ;;  %v305_v32 = vshrl.u32 %v1477_v2, 16  ;;  %v719_v40 = vld [vmem:[%s1350_s9 + $0x18] sm:$0xe]  ;;  %v215_v62 = vld [vmem:[%s1350_s9 + $0x30] sm:$0xf] }
  0x27   : > { %v284_v55 = vor.u32 %v283_v10, %v279_v33  ;;  %v424_v12 = vsel %vm1402_vm5, %v419_v5, %v423_v51  ;;  %v297_v25 = vrot.slane %v295_v15, 5  ;;  %v813_v30 = vunpack.c.l.b16 %v757_v21  ;;  %v213_v33 = vld [vmem:[%s1350_s9 + $0x24] sm:$0xf] }
  0x28   : > { %v459_v22 = vunpack.c.l.b16 %v424_v12  ;;  %v303_v31 = vrot.slane %v301_v18, 5  ;;  %v307_v38 = vrot.slane %v305_v32, 4  ;;  %v311_v39 = vshll.u32 %v234_v24, 16  ;;  %v236_v12 = vld [vmem:[%s1350_s9 + $0x38] sm:$0x1] }
  0x29   : > { %1252 = vmatpush.bf16.msrb.mxu3 %v1337_v13  ;;  %v285_v3 = vrot.slane %v284_v55, 4  ;;  %v428_v13 = vor.u32 %v427_v61, %v423_v51  ;;  %v760_v41 = vrot.slane %v1477_v2, 5  ;;  %v316_v10 = vshrl.u32 %v213_v33, 16  ;;  %v1511_v61 = vld [vmem:[%s1350_s9 + $0x2c] sm:$0x1] }
  0x2a   : > { %v827_v49 = vpack.c.b16 %v813_v30, %v812_v23  ;;  %v308_v50 = vor.u32 %v307_v38, %v303_v31  ;;  %v1184_v51 = vrot.slane %v719_v40, 9  ;;  %v788_v54 = vrot.slane %v1376_v27, 5  ;;  %v721_v38 = vld [vmem:[%s1350_s9 + $0x30] sm:$0xe]  ;;  %v723_v40 = vld [vmem:[%s1350_s9 + $0x48] sm:$0xe] }
  0x2b   : > { %v290_v9 = vsel %vm1402_vm5, %v285_v3, %v289_v47  ;;  %v429_v20 = vrot.slane %v428_v13, 4  ;;  %v319_v47 = vshll.u32 %v213_v33, 16  ;;  %v762_v53 = vrot.slane %v760_v41, 4  ;;  %v216_v13 = vld [vmem:[%s1350_s9 + $0x34] sm:$0xf] }
  0x2c   : > { %v448_v19 = vunpack.c.l.b16 %v290_v9  ;;  %v313_v56 = vrot.slane %v311_v39, 5  ;;  %v325_v57 = vshll.u32 %v1499_v43, 16  ;;  %v309_v58 = vrot.slane %v308_v50, 4 }
  0x2d   : > { %1253 = vmatpush.bf16.msrb.mxu3 %v1355_v16  ;;  %v294_v16 = vrot.slane %v292_v63, 4  ;;  %v434_v26 = vsel %vm1402_vm5, %v429_v20, %v433_v6  ;;  %v321_v59 = vrot.slane %v319_v47, 5  ;;  %v329_v60 = vshrl.u32 %v1499_v43, 16 }
  0x2e   : > { %v462_v34 = vpack.c.b16 %v448_v19, %v447_v4  ;;  %v460_v35 = vunpack.c.l.b16 %v434_v26  ;;  %v761_v2 = vsel %vm1408_vm7, %v1184_v51, %v760_v41  ;;  %v1522_v5 = vrot.slane %v325_v57, 5  ;;  %v1228_v51 = vld [vmem:[%s1350_s9 + $0x18] sm:$0xff] }
  0x2f   : > { %v298_v37 = vor.u32 %v297_v25, %v294_v16  ;;  %v331_v6 = vrot.slane %v329_v60, 4  ;;  %v340_v7 = vshrl.u32 %v215_v62, 16  ;;  %v790_v8 = vrot.slane %v788_v54, 4 }
  0x30   : > { %v468_v48 = vpack.c.b16 %v460_v35, %v459_v22  ;;  %v335_v9 = vshll.u32 %v1511_v61, 16  ;;  %v814_v15 = vunpack.c.l.b16 %v761_v2  ;;  %v343_v20 = vshll.u32 %v215_v62, 16 }
  0x31   : > { %1254 = vmatpush.bf16.msrb.mxu3 %v1393_v44  ;;  %v763_v44 = vrot.slane %v234_v24, 5  ;;  %v299_v55 = vrot.slane %v298_v37, 4  ;;  %v342_v19 = vrot.slane %v340_v7, 4  ;;  %v767_v21 = vrot.slane %v1499_v43, 5 }
  0x32   : > { %v349_v22 = vshll.u32 %v216_v13, 16  ;;  %v353_v23 = vshrl.u32 %v216_v13, 16  ;;  %v332_v16 = vor.u32 %v331_v6, %v1522_v5  ;;  %v345_v25 = vrot.slane %v343_v20, 5 }
  0x33   : > { %v764_v3 = vsel %vm1408_vm7, %v762_v53, %v763_v44  ;;  %v304_v4 = vsel %vm1402_vm5, %v299_v55, %v303_v31  ;;  %v359_v26 = vshll.u32 %v236_v12, 16  ;;  %v337_v31 = vrot.slane %v335_v9, 5  ;;  %v720_v53 = vld [vmem:[%s1350_s9 + $0x24] sm:$0xe]  ;;  %v237_v9 = vld [vmem:[%s1350_s9 + $0x44] sm:$0x1] }
  0x34   : > { %1119 = vmatmul.msk.bf16.gmra.mxu0 %vm496_vm6, %v462_v34  ;;  %1125 = vmatmul.msk.bf16.gmra.mxu3 %vm496_vm6, %v468_v48  ;;  %v815_v18 = vunpack.c.l.b16 %v764_v3  ;;  %v351_v32 = vrot.slane %v349_v22, 5  ;;  %v355_v33 = vrot.slane %v353_v23, 4  ;;  %v346_v35 = vor.u32 %v345_v25, %v342_v19 }
  0x35   : > { %1255 = vmatpush.bf16.msrb.mxu3 %v1430_v0  ;;  %1175 = vmatmul.msk.bf16.gmra.mxu1 %vm496_vm6, %v1227_v42  ;;  %v318_v0 = vrot.slane %v316_v10, 4  ;;  %v361_v37 = vrot.slane %v359_v26, 5  ;;  %v774_v39 = vrot.slane %v216_v13, 5  ;;  %v1186_v42 = vrot.slane %v721_v38, 9 }
  0x36   : > { %1216 = vmatmul.msk.bf16.gmra.mxu2 %vm496_vm6, %v827_v49  ;;  %v828_v34 = vpack.c.b16 %v815_v18, %v814_v15  ;;  %v356_v41 = vor.u32 %v355_v33, %v351_v32  ;;  %v1188_v10 = vrot.slane %v723_v40, 9  ;;  %v333_v48 = vrot.slane %v332_v16, 4  ;;  %v724_v40 = vld [vmem:[%s1350_s9 + $0x54] sm:$0xe] }
  0x37   : > { %v322_v63 = vor.u32 %v321_v59, %v318_v0  ;;  %v347_v49 = vrot.slane %v346_v35, 4  ;;  %v776_v50 = vrot.slane %v774_v39, 4  ;;  %v775_v55 = vsel %vm1408_vm7, %v1186_v42, %v774_v39  ;;  %v722_v39 = vld [vmem:[%s1350_s9 + $0x3c] sm:$0xe] }
  0x38   : > { %v357_v44 = vrot.slane %v356_v41, 4  ;;  %v818_v59 = vunpack.c.l.b16 %v775_v55  ;;  %v769_v3 = vrot.slane %v767_v21, 4  ;;  %v798_v55 = vrot.slane %v1460_v36, 5 }
  0x39   : > { %1256 = vmatpush.bf16.msra.mxu3 %v1326_v11  ;;  %v791_v11 = vrot.slane %v1379_v28, 5  ;;  %v314_v28 = vsel %vm1402_vm5, %v309_v58, %v313_v56  ;;  %v323_v30 = vrot.slane %v322_v63, 4  ;;  %v789_v56 = vsel %vm1408_vm7, %v1188_v10, %v788_v54  ;;  %v1232_v58 = vld [vmem:[%s1350_s9 + $0x48] sm:$0xff]  ;;  %v218_v63 = vld [vmem:[%s1350_s9 + $0x40] sm:$0xf] }
  0x3a   : > { %v450_v24 = vunpack.c.l.b16 %v314_v28  ;;  %v822_v60 = vunpack.c.l.b16 %v789_v56  ;;  %v362_v62 = vsel %vm1402_vm5, %v357_v44, %v361_v37  ;;  %v217_v28 = vld [vmem:[%s1350_s9 + $0x3c] sm:$0xf]  ;;  %v373_v18 = vshll.u32 %v218_v63, 16  ;;  %v1233_v56 = vld [vmem:[%s1350_s9 + $0x54] sm:$0xff] }
  0x3b   : > { %v792_v57 = vsel %vm1408_vm7, %v790_v8, %v791_v11  ;;  %v1185_v11 = vrot.slane %v720_v53, 9  ;;  %v1561_v6 = vunpack.c.l.b16 %v362_v62  ;;  %v328_v8 = vsel %vm1402_vm5, %v323_v30, %v1522_v5 }
  0x3c   : > { %v823_v54 = vunpack.c.l.b16 %v792_v57  ;;  %v367_v15 = vshll.u32 %v217_v28, 16  ;;  %v377_v19 = vshrl.u32 %v218_v63, 16  ;;  %v451_v25 = vunpack.c.l.b16 %v328_v8  ;;  %v1630_v8 = vld [vmem:[%s1702_s3] ss:$0 sm:$0xff] }
  0x3d   : > { %1257 = vmatpush.bf16.msra.mxu3 %v1342_v14  ;;  %v449_v14 = vunpack.c.l.b16 %v304_v4  ;;  %v770_v4 = vrot.slane %v1511_v61, 5  ;;  %v338_v61 = vsel %vm1402_vm5, %v333_v48, %v337_v31  ;;  %v768_v20 = vsel %vm1408_vm7, %v1185_v11, %v767_v21 }
  0x3e   : > { %v1566_v7 = vpack.c.b16 %v823_v54, %v822_v60  ;;  %v369_v23 = vrot.slane %v367_v15, 5  ;;  %v379_v16 = vrot.slane %v377_v19, 4  ;;  %v452_v26 = vunpack.c.l.b16 %v338_v61 }
  0x3f   : > { %v463_v47 = vpack.c.b16 %v450_v24, %v449_v14  ;;  %v771_v5 = vsel %vm1408_vm7, %v769_v3, %v770_v4  ;;  %v383_v14 = vshll.u32 %v237_v9, 16  ;;  %v375_v24 = vrot.slane %v373_v18, 5  ;;  %v1623_v4 = vld [vmem:[%s1701_s2] ss:$0 sm:$0xff] }
  0x40   : > { %v816_v33 = vunpack.c.l.b16 %v768_v20  ;;  %v817_v43 = vunpack.c.l.b16 %v771_v5  ;;  %v781_v35 = vrot.slane %v218_v63, 5  ;;  %v795_v37 = vrot.slane %v1452_v29, 5 }
  0x41   : > { %1258 = vmatpush.bf16.msra.mxu3 %v1360_v17  ;;  %v777_v17 = vrot.slane %v236_v12, 5  ;;  %v364_v12 = vshrl.u32 %v217_v28, 16  ;;  %v380_v31 = vor.u32 %v379_v16, %v375_v24  ;;  %v464_v38 = vpack.c.b16 %v452_v26, %v451_v25 }
  0x42   : > { %v783_v10 = vrot.slane %v781_v35, 4  ;;  %v829_v53 = vpack.c.b16 %v817_v43, %v816_v33  ;;  %v797_v44 = vrot.slane %v795_v37, 4 }
  0x43   : > { %v778_v0 = vsel %vm1408_vm7, %v776_v50, %v777_v17  ;;  %v366_v22 = vrot.slane %v364_v12, 4  ;;  %v381_v21 = vrot.slane %v380_v31, 4  ;;  %v1187_v17 = vrot.slane %v722_v39, 9 }
  0x44   : > { %v819_v27 = vunpack.c.l.b16 %v778_v0  ;;  %1120 = vmatmul.msk.bf16.gmra.mxu0 %vm496_vm6, %v463_v47  ;;  %1180 = vmatmul.msk.bf16.vlgmr.msrb.gmra.mxu3 %vm496_vm6, %v1232_v58  ;;  %v1189_v50 = vrot.slane %v724_v40, 9 }
  0x45   : > { %1259 = vmatpush.bf16.msra.mxu3 %v1398_v45  ;;  %v352_v45 = vsel %vm1402_vm5, %v347_v49, %v351_v32  ;;  %1176 = vmatmul.msk.bf16.gmra.mxu1 %vm496_vm6, %v1228_v51  ;;  %v370_v30 = vor.u32 %v369_v23, %v366_v22  ;;  %v385_v32 = vrot.slane %v383_v14, 5  ;;  %v784_v49 = vrot.slane %v237_v9, 5  ;;  %v1229_v51 = vld [vmem:[%s1350_s9 + $0x24] sm:$0xff] }
  0x46   : > { %v1554_v2 = vunpack.c.l.b16 %v352_v45  ;;  %v1564_v13 = vpack.c.b16 %v819_v27, %v818_v59  ;;  %1217 = vmatmul.msk.bf16.gmra.mxu2 %vm496_vm6, %v828_v34  ;;  %v782_v29 = vsel %vm1408_vm7, %v1187_v17, %v781_v35  ;;  %v796_v45 = vsel %vm1408_vm7, %v1189_v50, %v795_v37  ;;  %v1230_v27 = vld [vmem:[%s1350_s9 + $0x30] sm:$0xff]  ;;  %s1638_s9 = scalar_lea.vmem %s1703_s4, %s1225_s6 }
  0x47   : > { %v371_v34 = vrot.slane %v370_v30, 4  ;;  %v386_v42 = vsel %vm1402_vm5, %v381_v21, %v385_v32  ;;  %v785_v46 = vsel %vm1408_vm7, %v783_v10, %v784_v49  ;;  %v820_v58 = vunpack.c.l.b16 %v782_v29 }
  0x48   : > { %v456_v48 = vunpack.c.l.b16 %v386_v42  ;;  %v821_v0 = vunpack.c.l.b16 %v785_v46  ;;  %v799_v59 = vsel %vm1408_vm7, %v797_v44, %v798_v55  ;;  %v824_v60 = vunpack.c.l.b16 %v796_v45 }
  0x49   : > { %1260 = vmatpush.bf16.msra.mxu3 %v1435_v1  ;;  %v465_v1 = vpack.c.b16 %v1561_v6, %v1554_v2  ;;  %v376_v41 = vsel %vm1402_vm5, %v371_v34, %v375_v24  ;;  %v825_v62 = vunpack.c.l.b16 %v799_v59 }
  0x4a   : > { %v455_v47 = vunpack.c.l.b16 %v376_v41  ;;  %v831_v36 = vpack.c.b16 %v821_v0, %v820_v58 }
  0x4b   : > { %v833_v2 = vpack.c.b16 %v825_v62, %v824_v60 }
  0x4c   : > { %v466_v57 = vpack.c.b16 %v456_v48, %v455_v47 }
  0x54   : > { %1121 = vmatmul.msk.bf16.gmra.mxu0 %vm496_vm6, %v464_v38  ;;  %1181 = vmatmul.msk.bf16.gmra.mxu3 %vm496_vm6, %v1233_v56 }
  0x55   : > { %1177 = vmatmul.msk.bf16.gmra.mxu1 %vm496_vm6, %v1229_v51 }
  0x56   : > { %1218 = vmatmul.msk.bf16.gmra.mxu2 %vm496_vm6, %v829_v53 }
  0x64   : > { %1122 = vmatmul.msk.bf16.gmra.mxu0 %vm496_vm6, %v465_v1  ;;  %1221 = vmatmul.msk.bf16.vlgmr.msra.gmra.mxu3 %vm496_vm6, %v1566_v7 }
  0x65   : > { %1178 = vmatmul.msk.bf16.gmra.mxu1 %vm496_vm6, %v1230_v27 }
  0x66   : > { %1219 = vmatmul.msk.bf16.gmra.mxu2 %vm496_vm6, %v1564_v13 }
  0x74   : > { %1123 = vmatmul.msk.bf16.gmra.mxu0 %vm496_vm6, %v466_v57  ;;  %1222 = vmatmul.msk.bf16.gmra.mxu3 %vm496_vm6, %v833_v2 }
  0x75   : > { %1179 = vmatmul.msk.bf16.gmra.mxu1 %vm496_vm6, %v1231_v52 }
  0x76   : > { %1220 = vmatmul.msk.bf16.gmra.mxu2 %vm496_vm6, %v831_v36 }
  0xa1   : > { %v534_v54 = vpop.f32.mrf.mxu0 }
  0xa2   : > { %v677_v11 = vpop.f32.mrf.mxu1 }
  0xa3   : > { %v678_v3 = vadd.f32 %v677_v11, %v534_v54 }
  0xa7   : > { %v1625_v6 = vpop.f32.mrf.mxu3 }
  0xa9   : > { %v897_v13 = vpop.f32.mrf.mxu2  ;;  %v536_v61 = vpop.f32.mrf.mxu0 }
  0xaa   : > { %v937_v7 = vadd.f32 %v897_v13, %v678_v3  ;;  %v679_v1 = vpop.f32.mrf.mxu1 }
  0xab   : > { %v680_v12 = vadd.f32 %v679_v1, %v536_v61 }
  0xac   : > { %v957_v28 = vmul.f32 %v1623_v4, %v937_v7 }
  0xae   : > { %v977_v63 = vadd.f32 %v1630_v8, %v957_v28 }
  0xaf   : > { %v1640_v15 = vpop.f32.mrf.mxu3 }
  0xb0   : > { %v993_v9 = vmax.f32 %v977_v63, 0.0 }
  0xb1   : > { %v899_v18 = vpop.f32.mrf.mxu2  ;;  %v539_v20 = vpop.f32.mrf.mxu0 }
  0xb2   : > { %1009 = vst [vmem:[%s1638_s9] sm:$0xff] %v993_v9  ;;  %v938_v19 = vadd.f32 %v899_v18, %v680_v12  ;;  %v682_v5 = vpop.f32.mrf.mxu1 }
  0xb3   : > { %v683_v23 = vadd.f32 %v682_v5, %v539_v20 }
  0xb4   : > { %v958_v14 = vmul.f32 %v1623_v4, %v938_v19 }
  0xb6   : > { %v978_v22 = vadd.f32 %v1630_v8, %v958_v14 }
  0xb7   : > { %v1645_v16 = vpop.f32.mrf.mxu3 }
  0xb8   : > { %v994_v24 = vmax.f32 %v978_v22, 0.0 }
  0xb9   : > { %v902_v25 = vpop.f32.mrf.mxu2  ;;  %v541_v30 = vpop.f32.mrf.mxu0 }
  0xba   : > { %1010 = vst [vmem:[%s1638_s9 + $0x8] sm:$0xff] %v994_v24  ;;  %v939_v26 = vadd.f32 %v902_v25, %v683_v23  ;;  %v684_v31 = vpop.f32.mrf.mxu1 }
  0xbb   : > { %v685_v34 = vadd.f32 %v684_v31, %v541_v30 }
  0xbc   : > { %v959_v32 = vmul.f32 %v1623_v4, %v939_v26 }
  0xbe   : > { %v979_v33 = vadd.f32 %v1630_v8, %v959_v32 }
  0xbf   : > { %v1650_v21 = vpop.f32.mrf.mxu3 }
  0xc0   : > { %v995_v43 = vmax.f32 %v979_v33, 0.0 }
  0xc1   : > { %v904_v35 = vpop.f32.mrf.mxu2  ;;  %v544_v38 = vpop.f32.mrf.mxu0 }
  0xc2   : > { %1011 = vst [vmem:[%s1638_s9 + $0x10] sm:$0xff] %v995_v43  ;;  %v940_v37 = vadd.f32 %v904_v35, %v685_v34  ;;  %v687_v39 = vpop.f32.mrf.mxu1 }
  0xc3   : > { %v688_v42 = vadd.f32 %v687_v39, %v544_v38 }
  0xc4   : > { %v960_v40 = vmul.f32 %v1623_v4, %v940_v37 }
  0xc6   : > { %v980_v41 = vadd.f32 %v1630_v8, %v960_v40 }
  0xc7   : > { %v707_v10 = vpop.f32.mrf.mxu3 }
  0xc8   : > { %v996_v17 = vmax.f32 %v980_v41, 0.0  ;;  %v708_v19 = vadd.f32 %v707_v10, %v1625_v6 }
  0xc9   : > { %v907_v47 = vpop.f32.mrf.mxu2  ;;  %v546_v49 = vpop.f32.mrf.mxu0 }
  0xca   : > { %1012 = vst [vmem:[%s1638_s9 + $0x18] sm:$0xff] %v996_v17  ;;  %v941_v48 = vadd.f32 %v907_v47, %v688_v42  ;;  %v689_v50 = vpop.f32.mrf.mxu1 }
  0xcb   : > { %v690_v44 = vadd.f32 %v689_v50, %v546_v49 }
  0xcc   : > { %v961_v51 = vmul.f32 %v1623_v4, %v941_v48 }
  0xce   : > { %v981_v53 = vadd.f32 %v1630_v8, %v961_v51 }
  0xcf   : > { %v709_v55 = vpop.f32.mrf.mxu3 }
  0xd0   : > { %v997_v29 = vmax.f32 %v981_v53, 0.0  ;;  %v710_v6 = vadd.f32 %v709_v55, %v1640_v15 }
  0xd1   : > { %v909_v56 = vpop.f32.mrf.mxu2  ;;  %v549_v46 = vpop.f32.mrf.mxu0 }
  0xd2   : > { %1013 = vst [vmem:[%s1638_s9 + $0x20] sm:$0xff] %v997_v29  ;;  %v942_v57 = vadd.f32 %v909_v56, %v690_v44  ;;  %v692_v58 = vpop.f32.mrf.mxu1 }
  0xd3   : > { %v693_v59 = vadd.f32 %v692_v58, %v549_v46 }
  0xd4   : > { %v962_v45 = vmul.f32 %v1623_v4, %v942_v57 }
  0xd6   : > { %v982_v0 = vadd.f32 %v1630_v8, %v962_v45 }
  0xd7   : > { %v712_v62 = vpop.f32.mrf.mxu3 }
  0xd8   : > { %v998_v60 = vmax.f32 %v982_v0, 0.0  ;;  %v713_v48 = vadd.f32 %v712_v62, %v1645_v16 }
  0xd9   : > { %v912_v36 = vpop.f32.mrf.mxu2  ;;  %v551_v27 = vpop.f32.mrf.mxu0 }
  0xda   : > { %1014 = vst [vmem:[%s1638_s9 + $0x28] sm:$0xff] %v998_v60  ;;  %v943_v2 = vadd.f32 %v912_v36, %v693_v59  ;;  %v694_v52 = vpop.f32.mrf.mxu1 }
  0xdb   : > { %v695_v13 = vadd.f32 %v694_v52, %v551_v27 }
  0xdc   : > { %v963_v54 = vmul.f32 %v1623_v4, %v943_v2 }
  0xde   : > { %v983_v11 = vadd.f32 %v1630_v8, %v963_v54 }
  0xdf   : > { %v714_v7 = vpop.f32.mrf.mxu3 }
  0xe0   : > { %v999_v3 = vmax.f32 %v983_v11, 0.0  ;;  %v715_v45 = vadd.f32 %v714_v7, %v1650_v21 }
  0xe1   : > { %v914_v61 = vpop.f32.mrf.mxu2  ;;  %v554_v28 = vpop.f32.mrf.mxu0 }
  0xe2   : > { %1015 = vst [vmem:[%s1638_s9 + $0x30] sm:$0xff] %v999_v3  ;;  %v944_v1 = vadd.f32 %v914_v61, %v695_v13  ;;  %v697_v63 = vpop.f32.mrf.mxu1 }
  0xe3   : > { %v698_v18 = vadd.f32 %v697_v63, %v554_v28 }
  0xe4   : > { %v964_v9 = vmul.f32 %v1623_v4, %v944_v1 }
  0xe6   : > { %v984_v12 = vadd.f32 %v1630_v8, %v964_v9 }
  0xe7   : > { %v927_v14 = vpop.f32.mrf.mxu3 }
  0xe8   : > { %v1000_v20 = vmax.f32 %v984_v12, 0.0  ;;  %v949_v23 = vadd.f32 %v927_v14, %v708_v19 }
  0xe9   : > { %v917_v5 = vpop.f32.mrf.mxu2  ;;  %v556_v24 = vpop.f32.mrf.mxu0 }
  0xea   : > { %1016 = vst [vmem:[%s1638_s9 + $0x38] sm:$0xff] %v1000_v20  ;;  %v945_v22 = vadd.f32 %v917_v5, %v698_v18  ;;  %v699_v25 = vpop.f32.mrf.mxu1  ;;  %v969_v30 = vmul.f32 %v1623_v4, %v949_v23 }
  0xeb   : > { %v700_v34 = vadd.f32 %v699_v25, %v556_v24 }
  0xec   : > { %v965_v26 = vmul.f32 %v1623_v4, %v945_v22  ;;  %v989_v32 = vadd.f32 %v1630_v8, %v969_v30 }
  0xee   : > { %v985_v31 = vadd.f32 %v1630_v8, %v965_v26  ;;  %v1005_v43 = vmax.f32 %v989_v32, 0.0 }
  0xef   : > { %v929_v37 = vpop.f32.mrf.mxu3 }
  0xf0   : > { %v1001_v33 = vmax.f32 %v985_v31, 0.0  ;;  %v950_v39 = vadd.f32 %v929_v37, %v710_v6  ;;  %1021 = vst [vmem:[%s1638_s9 + $0x60] sm:$0xff] %v1005_v43 }
  0xf1   : > { %v919_v35 = vpop.f32.mrf.mxu2  ;;  %v559_v40 = vpop.f32.mrf.mxu0 }
  0xf2   : > { %1017 = vst [vmem:[%s1638_s9 + $0x40] sm:$0xff] %v1001_v33  ;;  %v946_v38 = vadd.f32 %v919_v35, %v700_v34  ;;  %v702_v41 = vpop.f32.mrf.mxu1  ;;  %v970_v17 = vmul.f32 %v1623_v4, %v950_v39 }
  0xf3   : > { %v703_v47 = vadd.f32 %v702_v41, %v559_v40 }
  0xf4   : > { %v966_v42 = vmul.f32 %v1623_v4, %v946_v38  ;;  %v990_v15 = vadd.f32 %v1630_v8, %v970_v17 }
  0xf6   : > { %v986_v10 = vadd.f32 %v1630_v8, %v966_v42  ;;  %v1006_v50 = vmax.f32 %v990_v15, 0.0 }
  0xf7   : > { %v932_v53 = vpop.f32.mrf.mxu3 }
  0xf8   : > { %v1002_v49 = vmax.f32 %v986_v10, 0.0  ;;  %v951_v44 = vadd.f32 %v932_v53, %v713_v48  ;;  %1022 = vst [vmem:[%s1638_s9 + $0x68] sm:$0xff] %v1006_v50 }
  0xf9   : > { %v922_v51 = vpop.f32.mrf.mxu2  ;;  %v561_v57 = vpop.f32.mrf.mxu0 }
  0xfa   : > { %1018 = vst [vmem:[%s1638_s9 + $0x48] sm:$0xff] %v1002_v49  ;;  %v947_v29 = vadd.f32 %v922_v51, %v703_v47  ;;  %v971_v56 = vmul.f32 %v1623_v4, %v951_v44  ;;  %v704_v46 = vpop.f32.mrf.mxu1 }
  0xfb   : > { %v705_v60 = vadd.f32 %v704_v46, %v561_v57 }
  0xfc   : > { %v967_v55 = vmul.f32 %v1623_v4, %v947_v29  ;;  %v991_v16 = vadd.f32 %v1630_v8, %v971_v56 }
  0xfe   : > { %v987_v58 = vadd.f32 %v1630_v8, %v967_v55  ;;  %v1007_v59 = vmax.f32 %v991_v16, 0.0 }
  0xff   : > { %v934_v36 = vpop.f32.mrf.mxu3 }
 0x100   : > { %v1003_v0 = vmax.f32 %v987_v58, 0.0  ;;  %v952_v27 = vadd.f32 %v934_v36, %v715_v45  ;;  %1023 = vst [vmem:[%s1638_s9 + $0x70] sm:$0xff] %v1007_v59 }
 0x101   : > { %v924_v62 = vpop.f32.mrf.mxu2 }
 0x102   : > { %1019 = vst [vmem:[%s1638_s9 + $0x50] sm:$0xff] %v1003_v0  ;;  %v948_v2 = vadd.f32 %v924_v62, %v705_v60  ;;  %v972_v54 = vmul.f32 %v1623_v4, %v952_v27 }
 0x104   : > { %v968_v52 = vmul.f32 %v1623_v4, %v948_v2  ;;  %v992_v3 = vadd.f32 %v1630_v8, %v972_v54 }
 0x106   : > { %v988_v11 = vadd.f32 %v1630_v8, %v968_v52  ;;  %v1008_v13 = vmax.f32 %v992_v3, 0.0 }
 0x108   : > { %v1004_v21 = vmax.f32 %v988_v11, 0.0  ;;  %1024 = vst [vmem:[%s1638_s9 + $0x78] sm:$0xff] %v1008_v13 }
 0x10a   : > { %1020 = vst [vmem:[%s1638_s9 + $0x58] sm:$0xff] %v1004_v21 }
 0x10b PF: > { %s14_s15 = sadd.s32 1, %s1278_s15  }
 0x10c   : > { %p11_p4 = scmp.ge.s32.totalorder %s14_s15, 4  }
 0x10e   :  { %13 = sbr.rel (!%p11_p4) target bundleno = 1 (0x1), region = 68 }

</bundles_post_ra>
